<compile_context>
chip_gen: v7x
topology: tpu7x:2x2x1
jax: 0.10.0
libtpu: 0.0.40
codegen_flags: <defaults>
</compile_context>

<pallas_src>
import functools
import math

import jax
import jax.numpy as jnp
from jax.experimental import pallas as pl
from jax.experimental.pallas import tpu as pltpu

# bf16 MXU operands: higher matmul throughput on v6e/v7x and half the weight
# DMA bytes; accumulation is f32 and all elementwise math stays f32.
MXU_DTYPE = jnp.bfloat16

_LN_EPS = 1e-5
_NEG_INF = -1e30                      # finite "masked" value (no inf-inf NaN)
_INV_SQRT2 = 0.7071067811865476
_VMEM_LIMIT = 48 << 20                # explicit scoped-VMEM budget (v7x-safe)


# ----------------------------------------------------------------------------
# Kernels
# ----------------------------------------------------------------------------
def _layernorm(x, gamma, beta=None, eps=_LN_EPS):
    mu = jnp.mean(x, axis=-1, keepdims=True)
    var = jnp.mean(jnp.square(x - mu), axis=-1, keepdims=True)
    y = (x - mu) * jax.lax.rsqrt(var + eps) * gamma
    if beta is not None:
        y = y + beta
    return y


def decoder_layer_kernel(x_ref,
                         g1_ref, wqkv_ref, bqkv_ref, wo_ref, bo_ref,
                         g2_ref, w1_ref, b1_ref, w2_ref, b2_ref,
                         o_ref, x_scr,
                         *, n_heads, d_head):
    layer = pl.program_id(1)
    n_layers = pl.num_programs(1)

    # Load this batch's residual stream once; keep it resident across layers.
    @pl.when(layer == 0)
    def _():
        x_scr[...] = x_ref[...]

    x = x_scr[...]                                     # (S, D) f32
    S, D = x.shape
    H, dh = n_heads, d_head

    # ---- LayerNorm 1 (bias=False) + fused QKV projection --------------------
    xn = _layernorm(x, g1_ref[0])                      # (S, D) f32
    qkv = jnp.dot(xn.astype(MXU_DTYPE), wqkv_ref[0],
                  preferred_element_type=jnp.float32) + bqkv_ref[0]  # (S, 3D)

    # split q/k/v and heads (1/sqrt(d_head) already folded into q at pack time)
    def _heads(block):                                 # (S, D) -> (H, S, dh)
        return jnp.transpose(block.reshape(S, H, dh), (1, 0, 2))

    q = _heads(qkv[:, :D])
    k = _heads(qkv[:, D:2 * D])
    v = _heads(qkv[:, 2 * D:])

    # ---- causal attention, all heads batched ---------------------------------
    s = jnp.einsum('hqd,hkd->hqk', q.astype(MXU_DTYPE), k.astype(MXU_DTYPE),
                   preferred_element_type=jnp.float32)           # (H, S, S)
    row = jax.lax.broadcasted_iota(jnp.int32, (S, S), 0)
    col = jax.lax.broadcasted_iota(jnp.int32, (S, S), 1)
    s = jnp.where((row >= col)[None], s, _NEG_INF)     # in-kernel causal mask
    s = s - jnp.max(s, axis=-1, keepdims=True)
    p = jnp.exp(s)
    p = p * pl.reciprocal(jnp.sum(p, axis=-1, keepdims=True), approx=True)
    ctx = jnp.einsum('hqk,hkd->hqd', p.astype(MXU_DTYPE), v.astype(MXU_DTYPE),
                     preferred_element_type=jnp.float32)         # (H, S, dh)

    # concat heads -> one lane-dense output projection
    ctx = jnp.transpose(ctx, (1, 0, 2)).reshape(S, D)
    attn = jnp.dot(ctx.astype(MXU_DTYPE), wo_ref[0],
                   preferred_element_type=jnp.float32) + bo_ref[0]

    x = x + attn                                       # residual 1

    # ---- LayerNorm 2 (bias=False) + FFN --------------------------------------
    xn = _layernorm(x, g2_ref[0])
    h = jnp.dot(xn.astype(MXU_DTYPE), w1_ref[0],
                preferred_element_type=jnp.float32) + b1_ref[0]
    h = 0.5 * h * (1.0 + jax.lax.erf(h * _INV_SQRT2))  # exact torch GELU
    h = jnp.dot(h.astype(MXU_DTYPE), w2_ref[0],
                preferred_element_type=jnp.float32) + b2_ref[0]

    x = x + h                                          # residual 2
    x_scr[...] = x

    @pl.when(layer == n_layers - 1)
    def _():
        o_ref[...] = x.astype(o_ref.dtype)


def head_kernel(x_ref, gf_ref, bf_ref, wh_ref, bh_ref, o_ref):
    xf = _layernorm(x_ref[...], gf_ref[...], bf_ref[...])
    logits = jnp.dot(xf.astype(MXU_DTYPE), wh_ref[...],
                     preferred_element_type=jnp.float32) + bh_ref[...]
    o_ref[...] = logits.astype(o_ref.dtype)


# ----------------------------------------------------------------------------
# pallas_call wrappers
# ----------------------------------------------------------------------------
def yagpt_decoder_pallas(x_flat, packed, *, seq_len, n_heads):
    N, D = x_flat.shape
    L = packed["g1"].shape[0]
    B = N // seq_len
    dh = D // n_heads

    kern = functools.partial(decoder_layer_kernel, n_heads=n_heads, d_head=dh)

    def layer_spec(shape):
        """Per-layer slab of a layer-stacked param (follows the layer axis)."""
        nd = len(shape)
        return pl.BlockSpec((1,) + tuple(shape[1:]),
                            lambda b, l: (l,) + (0,) * (nd - 1))

    row_spec = pl.BlockSpec((seq_len, D), lambda b, l: (b, 0))

    in_specs = [
        row_spec,                           # x: this batch's rows
        layer_spec(packed["g1"].shape),     # (L, 1, D)
        layer_spec(packed["wqkv"].shape),   # (L, D, 3D)
        layer_spec(packed["bqkv"].shape),   # (L, 1, 3D)
        layer_spec(packed["wo"].shape),     # (L, D, D)
        layer_spec(packed["bo"].shape),     # (L, 1, D)
        layer_spec(packed["g2"].shape),     # (L, 1, D)
        layer_spec(packed["w1"].shape),     # (L, D, d_ff)
        layer_spec(packed["b1"].shape),     # (L, 1, d_ff)
        layer_spec(packed["w2"].shape),     # (L, d_ff, D)
        layer_spec(packed["b2"].shape),     # (L, 1, D)
    ]

    return pl.pallas_call(
        kern,
        out_shape=jax.ShapeDtypeStruct((N, D), jnp.float32),
        grid=(B, L),
        in_specs=in_specs,
        out_specs=row_spec,
        scratch_shapes=[pltpu.VMEM((seq_len, D), jnp.float32)],
        compiler_params=pltpu.CompilerParams(
            dimension_semantics=("parallel", "arbitrary"),
            vmem_limit_bytes=_VMEM_LIMIT),
    )(x_flat, packed["g1"], packed["wqkv"], packed["bqkv"], packed["wo"],
      packed["bo"], packed["g2"], packed["w1"], packed["b1"], packed["w2"],
      packed["b2"])


def yagpt_head_pallas(x_flat, packed):
    N, D = x_flat.shape
    V = packed["wh"].shape[1]

    def const_spec(shape):
        nd = len(shape)
        return pl.BlockSpec(tuple(shape), lambda i: (0,) * nd)

    return pl.pallas_call(
        head_kernel,
        out_shape=jax.ShapeDtypeStruct((N, V), jnp.float32),
        grid=(1,),
        in_specs=[const_spec((N, D)),
                  const_spec(packed["gf"].shape),
                  const_spec(packed["bf"].shape),
                  const_spec(packed["wh"].shape),    # (D, V); V=128 lane-dense
                  const_spec(packed["bh"].shape)],
        out_specs=const_spec((N, V)),
        compiler_params=pltpu.CompilerParams(
            dimension_semantics=("parallel",),
            vmem_limit_bytes=_VMEM_LIMIT),
    )(x_flat, packed["gf"], packed["bf"], packed["wh"], packed["bh"])


# ----------------------------------------------------------------------------
# Parameters (PyTorch-equivalent init), packing, positional encoding
# ----------------------------------------------------------------------------
def init_params(key, *, d_model, d_ff, n_layers, vocab_size):
    """Deterministic params matching the PyTorch module's init distributions.
    Linear weights are stored pre-transposed as (in_features, out_features)."""
    keys = iter(jax.random.split(key, 8 * n_layers + 8))

    def linear(fan_in, fan_out):
        bound = 1.0 / math.sqrt(fan_in)
        w = jax.random.uniform(next(keys), (fan_in, fan_out), jnp.float32,
                               -bound, bound)
        b = jax.random.uniform(next(keys), (fan_out,), jnp.float32,
                               -bound, bound)
        return w, b

    params = {}
    std = math.sqrt(2.0 / (vocab_size + d_model))          # xavier_normal_
    params["emb"] = jax.random.normal(next(keys), (vocab_size, d_model),
                                      jnp.float32) * std

    layers = []
    for _ in range(n_layers):
        wqkv, bqkv = linear(d_model, 3 * d_model)
        wo, bo = linear(d_model, d_model)
        w1, b1 = linear(d_model, d_ff)
        w2, b2 = linear(d_ff, d_model)
        layers.append(dict(
            g1=jnp.ones((d_model,), jnp.float32),
            wqkv=wqkv, bqkv=bqkv, wo=wo, bo=bo,
            g2=jnp.ones((d_model,), jnp.float32),
            w1=w1, b1=b1, w2=w2, b2=b2))
    params["layers"] = layers

    wh, bh = linear(d_model, vocab_size)
    params["final"] = dict(gf=jnp.ones((d_model,), jnp.float32),
                           bf=jnp.zeros((d_model,), jnp.float32),
                           wh=wh, bh=bh)
    return params


def pack_params(params, *, n_heads, mxu_dtype=MXU_DTYPE):
    """Stack per-layer weights on a leading layer axis; keep QKV / W_o in their
    fused (D, 3D) / (D, D) layouts (single wide matmuls in the kernel) and fold
    the 1/sqrt(d_head) attention scale into the Q columns."""
    layers = params["layers"]
    d_model = layers[0]["wqkv"].shape[0]
    dh = d_model // n_heads
    scale = 1.0 / math.sqrt(dh)
    col_scale = jnp.concatenate(
        [jnp.full((d_model,), scale, jnp.float32),
         jnp.ones((2 * d_model,), jnp.float32)], axis=0)

    per = {k: [] for k in ("g1", "wqkv", "bqkv", "wo", "bo",
                           "g2", "w1", "b1", "w2", "b2")}
    for lp in layers:
        wqkv = lp["wqkv"] * col_scale[None, :]
        bqkv = lp["bqkv"] * col_scale
        per["g1"].append(lp["g1"].reshape(1, d_model))
        per["wqkv"].append(wqkv)
        per["bqkv"].append(bqkv.reshape(1, 3 * d_model))
        per["wo"].append(lp["wo"])
        per["bo"].append(lp["bo"].reshape(1, d_model))
        per["g2"].append(lp["g2"].reshape(1, d_model))
        per["w1"].append(lp["w1"])
        per["b1"].append(lp["b1"].reshape(1, -1))
        per["w2"].append(lp["w2"])
        per["b2"].append(lp["b2"].reshape(1, -1))

    packed = {k: jnp.stack(v, axis=0) for k, v in per.items()}
    for k in ("wqkv", "wo", "w1", "w2"):               # MXU operands only
        packed[k] = packed[k].astype(mxu_dtype)

    fin = params["final"]
    packed["gf"] = fin["gf"].reshape(1, -1)
    packed["bf"] = fin["bf"].reshape(1, -1)
    packed["wh"] = fin["wh"].astype(mxu_dtype)
    packed["bh"] = fin["bh"].reshape(1, -1)
    return packed


def positional_encoding(seq_len, d_model):
    pos = jnp.arange(seq_len, dtype=jnp.float32)[:, None]
    dim = jnp.arange(d_model, dtype=jnp.float32)[None, :]
    # NOTE: YaGPT uses the *raw* dimension index in the exponent for both the
    # sin (even) and cos (odd) slots -- reproduced verbatim from the spec.
    shared = pos / (10000.0 ** (2.0 * dim / d_model))
    return jnp.where((jnp.arange(d_model) % 2 == 0)[None, :],
                     jnp.sin(shared), jnp.cos(shared))


# ----------------------------------------------------------------------------
# Full forward pass
# ----------------------------------------------------------------------------
def yagpt_forward(input_ids, params, packed, *, seq_len, d_model, n_heads):
    B, S = input_ids.shape
    # Embedding gather + sqrt(d_model) scale + positional encoding: thin JAX
    # glue; dropout layers are identity at inference.
    emb = params["emb"][input_ids] * math.sqrt(d_model)
    emb = emb + positional_encoding(seq_len, d_model)[None]
    x = emb.astype(jnp.float32).reshape(B * S, d_model)
    x = yagpt_decoder_pallas(x, packed, seq_len=seq_len, n_heads=n_heads)
    logits = yagpt_head_pallas(x, packed)
    return logits.reshape(B, S, -1)


# ----------------------------------------------------------------------------
# Main
# ----------------------------------------------------------------------------
if __name__ == "__main__":
    # YaGPTConfig(seq_len=8, d_model=32, n_heads=4, n_layers=2, d_ff=64,
    #             dropout=0.0, vocab_size=128)
    SEQ_LEN, D_MODEL, N_HEADS, N_LAYERS, D_FF, VOCAB = 8, 32, 4, 2, 64, 128
    BATCH = 2
    assert D_MODEL % N_HEADS == 0

    key = jax.random.PRNGKey(0)
    k_params, k_ids = jax.random.split(key)
    params = init_params(k_params, d_model=D_MODEL, d_ff=D_FF,
                         n_layers=N_LAYERS, vocab_size=VOCAB)
    packed = pack_params(params, n_heads=N_HEADS)
    input_ids = jax.random.randint(k_ids, (BATCH, SEQ_LEN), 0, VOCAB,
                                   dtype=jnp.int32)

    logits = yagpt_forward(input_ids, params, packed,
                           seq_len=SEQ_LEN, d_model=D_MODEL, n_heads=N_HEADS)
    logits = jax.block_until_ready(logits)
    assert logits.shape == (BATCH, SEQ_LEN, VOCAB)
    assert bool(jnp.all(jnp.isfinite(logits)))
    print("KERNEL_OK")
</pallas_src>

<mosaic_0001>
module attributes {stable_mosaic.version = 11 : i64} {
  func.func @decoder_layer_kernel(%arg0: i32, %arg1: i32, %arg2: memref<8x32xf32, #tpu.memory_space<vmem>>, %arg3: memref<1x1x32xf32, #tpu.memory_space<vmem>>, %arg4: memref<1x32x96xbf16, #tpu.memory_space<vmem>>, %arg5: memref<1x1x96xf32, #tpu.memory_space<vmem>>, %arg6: memref<1x32x32xbf16, #tpu.memory_space<vmem>>, %arg7: memref<1x1x32xf32, #tpu.memory_space<vmem>>, %arg8: memref<1x1x32xf32, #tpu.memory_space<vmem>>, %arg9: memref<1x32x64xbf16, #tpu.memory_space<vmem>>, %arg10: memref<1x1x64xf32, #tpu.memory_space<vmem>>, %arg11: memref<1x64x32xbf16, #tpu.memory_space<vmem>>, %arg12: memref<1x1x32xf32, #tpu.memory_space<vmem>>, %arg13: memref<8x32xf32, #tpu.memory_space<vmem>>, %arg14: memref<8x32xf32, #tpu.memory_space<vmem>>) attributes {dimension_semantics = [#tpu.dimension_semantics<parallel>, #tpu.dimension_semantics<arbitrary>], iteration_bounds = array<i64: 2, 2>, scalar_prefetch = 0 : i64, scratch_operands = 1 : i64, tpu.core_type = #tpu.core_type<tc>, window_params = [{transform_indices = @transform_0, window_bounds = array<i64: 8, 32>}, {transform_indices = @transform_1, window_bounds = array<i64: 1, 1, 32>}, {transform_indices = @transform_2, window_bounds = array<i64: 1, 32, 96>}, {transform_indices = @transform_3, window_bounds = array<i64: 1, 1, 96>}, {transform_indices = @transform_4, window_bounds = array<i64: 1, 32, 32>}, {transform_indices = @transform_5, window_bounds = array<i64: 1, 1, 32>}, {transform_indices = @transform_6, window_bounds = array<i64: 1, 1, 32>}, {transform_indices = @transform_7, window_bounds = array<i64: 1, 32, 64>}, {transform_indices = @transform_8, window_bounds = array<i64: 1, 1, 64>}, {transform_indices = @transform_9, window_bounds = array<i64: 1, 64, 32>}, {transform_indices = @transform_10, window_bounds = array<i64: 1, 1, 32>}, {transform_indices = @transform_11, window_bounds = array<i64: 8, 32>}]} {
    %c0_i32 = arith.constant 0 : i32
    %0 = arith.cmpi eq, %arg1, %c0_i32 : i32
    %1 = arith.extui %0 : i1 to i32
    %c0_i32_0 = arith.constant 0 : i32
    %2 = arith.cmpi ne, %1, %c0_i32_0 : i32
    scf.if %2 {
      %c0_56 = arith.constant 0 : index
      %c0_57 = arith.constant 0 : index
      %129 = vector.load %arg2[%c0_56, %c0_57] : memref<8x32xf32, #tpu.memory_space<vmem>>, vector<8x32xf32>
      %c0_58 = arith.constant 0 : index
      %c0_59 = arith.constant 0 : index
      %130 = vector.load %arg14[%c0_58, %c0_59] : memref<8x32xf32, #tpu.memory_space<vmem>>, vector<8x32xf32>
      tpu.vector_store %arg14[%c0_58, %c0_59], %129 {strides = array<i32>} : memref<8x32xf32, #tpu.memory_space<vmem>>, vector<8x32xf32>,
    } else {
    }
    %c0 = arith.constant 0 : index
    %c0_1 = arith.constant 0 : index
    %3 = vector.load %arg14[%c0, %c0_1] : memref<8x32xf32, #tpu.memory_space<vmem>>, vector<8x32xf32>
    %c0_2 = arith.constant 0 : index
    %c0_3 = arith.constant 0 : index
    %c0_4 = arith.constant 0 : index
    %4 = vector.load %arg3[%c0_2, %c0_3, %c0_4] : memref<1x1x32xf32, #tpu.memory_space<vmem>>, vector<1x1x32xf32>
    %5 = vector.shape_cast %4 : vector<1x1x32xf32> to vector<1x32xf32>
    %cst = arith.constant dense<0.000000e+00> : vector<8xf32>
    %6 = vector.multi_reduction <add>, %3, %cst [1] : vector<8x32xf32> to vector<8xf32>
    %7 = vector.shape_cast %6 : vector<8xf32> to vector<8x1xf32>
    %cst_5 = arith.constant 3.200000e+01 : f32
    %8 = vector.broadcast %cst_5 : f32 to vector<8x1xf32>
    %9 = arith.divf %7, %8 : vector<8x1xf32>
    %10 = vector.broadcast %9 : vector<8x1xf32> to vector<8x32xf32>
    %11 = arith.subf %3, %10 : vector<8x32xf32>
    %12 = arith.mulf %11, %11 : vector<8x32xf32>
    %cst_6 = arith.constant dense<0.000000e+00> : vector<8xf32>
    %13 = vector.multi_reduction <add>, %12, %cst_6 [1] : vector<8x32xf32> to vector<8xf32>
    %14 = vector.shape_cast %13 : vector<8xf32> to vector<8x1xf32>
    %cst_7 = arith.constant 3.200000e+01 : f32
    %15 = vector.broadcast %cst_7 : f32 to vector<8x1xf32>
    %16 = arith.divf %14, %15 : vector<8x1xf32>
    %17 = vector.broadcast %9 : vector<8x1xf32> to vector<8x32xf32>
    %18 = arith.subf %3, %17 : vector<8x32xf32>
    %cst_8 = arith.constant 9.99999974E-6 : f32
    %19 = vector.broadcast %cst_8 : f32 to vector<8x1xf32>
    %20 = arith.addf %16, %19 : vector<8x1xf32>
    %21 = math.rsqrt %20 : vector<8x1xf32>
    %22 = vector.broadcast %21 : vector<8x1xf32> to vector<8x32xf32>
    %23 = arith.mulf %18, %22 : vector<8x32xf32>
    %24 = vector.broadcast %5 : vector<1x32xf32> to vector<8x32xf32>
    %25 = arith.mulf %23, %24 : vector<8x32xf32>
    %26 = arith.truncf %25 : vector<8x32xf32> to vector<8x32xbf16>
    %c0_9 = arith.constant 0 : index
    %c0_10 = arith.constant 0 : index
    %c0_11 = arith.constant 0 : index
    %27 = vector.load %arg4[%c0_9, %c0_10, %c0_11] : memref<1x32x96xbf16, #tpu.memory_space<vmem>>, vector<1x32x96xbf16>
    %28 = vector.shape_cast %27 : vector<1x32x96xbf16> to vector<32x96xbf16>
    %cst_12 = arith.constant dense<0.000000e+00> : vector<8x96xf32>
    %29 = tpu.matmul %26, %28, %cst_12 {dimension_numbers = #tpu.dot_dimension_numbers<[1], [0], [0], [1], [0, 0, 1, 1], [], []>} : vector<8x32xbf16>, vector<32x96xbf16>, vector<8x96xf32> -> vector<8x96xf32>
    %c0_13 = arith.constant 0 : index
    %c0_14 = arith.constant 0 : index
    %c0_15 = arith.constant 0 : index
    %30 = vector.load %arg5[%c0_13, %c0_14, %c0_15] : memref<1x1x96xf32, #tpu.memory_space<vmem>>, vector<1x1x96xf32>
    %31 = vector.shape_cast %30 : vector<1x1x96xf32> to vector<1x96xf32>
    %32 = vector.broadcast %31 : vector<1x96xf32> to vector<8x96xf32>
    %33 = arith.addf %29, %32 : vector<8x96xf32>
    %34 = vector.extract_strided_slice %33 {offsets = [0, 0], sizes = [8, 32], strides = [1, 1]} : vector<8x96xf32> to vector<8x32xf32>
    %35 = vector.shape_cast %34 : vector<8x32xf32> to vector<8x4x8xf32>
    %36 = tpu.transpose %35, [1, 0, 2] : vector<8x4x8xf32> -> vector<4x8x8xf32>
    %37 = vector.extract_strided_slice %33 {offsets = [0, 32], sizes = [8, 32], strides = [1, 1]} : vector<8x96xf32> to vector<8x32xf32>
    %38 = vector.shape_cast %37 : vector<8x32xf32> to vector<8x4x8xf32>
    %39 = tpu.transpose %38, [1, 0, 2] : vector<8x4x8xf32> -> vector<4x8x8xf32>
    %40 = vector.extract_strided_slice %33 {offsets = [0, 64], sizes = [8, 32], strides = [1, 1]} : vector<8x96xf32> to vector<8x32xf32>
    %41 = vector.shape_cast %40 : vector<8x32xf32> to vector<8x4x8xf32>
    %42 = tpu.transpose %41, [1, 0, 2] : vector<8x4x8xf32> -> vector<4x8x8xf32>
    %43 = arith.truncf %36 : vector<4x8x8xf32> to vector<4x8x8xbf16>
    %44 = arith.truncf %39 : vector<4x8x8xf32> to vector<4x8x8xbf16>
    "tpu.trace_start"() <{level = 10 : i32, message = "hqd,hkd->hqk"}> : () -> ()
    %cst_16 = arith.constant dense<0.000000e+00> : vector<4x8x8xf32>
    %45 = tpu.matmul %43, %44, %cst_16 {dimension_numbers = #tpu.dot_dimension_numbers<[2], [2], [1], [1], [0, 0, 0, 1, 1, 1], [0], [0]>} : vector<4x8x8xbf16>, vector<4x8x8xbf16>, vector<4x8x8xf32> -> vector<4x8x8xf32>
    "tpu.trace_stop"() : () -> ()
    %46 = tpu.iota {dimensions = array<i32: 0>} : vector<8x8xi32>
    %47 = tpu.iota {dimensions = array<i32: 1>} : vector<8x8xi32>
    %48 = arith.cmpi sge, %46, %47 : vector<8x8xi32>
    %49 = vector.shape_cast %48 : vector<8x8xi1> to vector<1x8x8xi1>
    %cst_17 = arith.constant -1.000000e+30 : f32
    %50 = vector.shape_cast %49 : vector<1x8x8xi1> to vector<1x8x8xi1>
    %51 = vector.broadcast %50 : vector<1x8x8xi1> to vector<4x8x8xi1>
    %52 = vector.broadcast %cst_17 : f32 to vector<4x8x8xf32>
    %53 = arith.select %51, %45, %52 : vector<4x8x8xi1>, vector<4x8x8xf32>
    %cst_18 = arith.constant dense<0xFF800000> : vector<4x8xf32>
    %54 = vector.multi_reduction <maximumf>, %53, %cst_18 [2] : vector<4x8x8xf32> to vector<4x8xf32>
    %55 = vector.shape_cast %54 : vector<4x8xf32> to vector<4x8x1xf32>
    %56 = vector.broadcast %55 : vector<4x8x1xf32> to vector<4x8x8xf32>
    %57 = arith.subf %53, %56 : vector<4x8x8xf32>
    %58 = math.exp %57 : vector<4x8x8xf32>
    %cst_19 = arith.constant dense<0.000000e+00> : vector<4x8xf32>
    %59 = vector.multi_reduction <add>, %58, %cst_19 [2] : vector<4x8x8xf32> to vector<4x8xf32>
    %60 = vector.shape_cast %59 : vector<4x8xf32> to vector<4x8x1xf32>
    %61 = tpu.reciprocal %60 {approx = true} : vector<4x8x1xf32> -> vector<4x8x1xf32>
    %62 = vector.broadcast %61 : vector<4x8x1xf32> to vector<4x8x8xf32>
    %63 = arith.mulf %58, %62 : vector<4x8x8xf32>
    %64 = arith.truncf %63 : vector<4x8x8xf32> to vector<4x8x8xbf16>
    %65 = arith.truncf %42 : vector<4x8x8xf32> to vector<4x8x8xbf16>
    "tpu.trace_start"() <{level = 10 : i32, message = "hqk,hkd->hqd"}> : () -> ()
    %cst_20 = arith.constant dense<0.000000e+00> : vector<4x8x8xf32>
    %66 = tpu.matmul %64, %65, %cst_20 {dimension_numbers = #tpu.dot_dimension_numbers<[2], [1], [1], [2], [0, 0, 0, 1, 1, 2], [0], [0]>} : vector<4x8x8xbf16>, vector<4x8x8xbf16>, vector<4x8x8xf32> -> vector<4x8x8xf32>
    "tpu.trace_stop"() : () -> ()
    %67 = tpu.transpose %66, [1, 0, 2] : vector<4x8x8xf32> -> vector<8x4x8xf32>
    %68 = vector.shape_cast %67 : vector<8x4x8xf32> to vector<8x32xf32>
    %69 = arith.truncf %68 : vector<8x32xf32> to vector<8x32xbf16>
    %c0_21 = arith.constant 0 : index
    %c0_22 = arith.constant 0 : index
    %c0_23 = arith.constant 0 : index
    %70 = vector.load %arg6[%c0_21, %c0_22, %c0_23] : memref<1x32x32xbf16, #tpu.memory_space<vmem>>, vector<1x32x32xbf16>
    %71 = vector.shape_cast %70 : vector<1x32x32xbf16> to vector<32x32xbf16>
    %cst_24 = arith.constant dense<0.000000e+00> : vector<8x32xf32>
    %72 = tpu.matmul %69, %71, %cst_24 {dimension_numbers = #tpu.dot_dimension_numbers<[1], [0], [0], [1], [0, 0, 1, 1], [], []>} : vector<8x32xbf16>, vector<32x32xbf16>, vector<8x32xf32> -> vector<8x32xf32>
    %c0_25 = arith.constant 0 : index
    %c0_26 = arith.constant 0 : index
    %c0_27 = arith.constant 0 : index
    %73 = vector.load %arg7[%c0_25, %c0_26, %c0_27] : memref<1x1x32xf32, #tpu.memory_space<vmem>>, vector<1x1x32xf32>
    %74 = vector.shape_cast %73 : vector<1x1x32xf32> to vector<1x32xf32>
    %75 = vector.broadcast %74 : vector<1x32xf32> to vector<8x32xf32>
    %76 = arith.addf %72, %75 : vector<8x32xf32>
    %77 = arith.addf %3, %76 : vector<8x32xf32>
    %c0_28 = arith.constant 0 : index
    %c0_29 = arith.constant 0 : index
    %c0_30 = arith.constant 0 : index
    %78 = vector.load %arg8[%c0_28, %c0_29, %c0_30] : memref<1x1x32xf32, #tpu.memory_space<vmem>>, vector<1x1x32xf32>
    %79 = vector.shape_cast %78 : vector<1x1x32xf32> to vector<1x32xf32>
    %cst_31 = arith.constant dense<0.000000e+00> : vector<8xf32>
    %80 = vector.multi_reduction <add>, %77, %cst_31 [1] : vector<8x32xf32> to vector<8xf32>
    %81 = vector.shape_cast %80 : vector<8xf32> to vector<8x1xf32>
    %cst_32 = arith.constant 3.200000e+01 : f32
    %82 = vector.broadcast %cst_32 : f32 to vector<8x1xf32>
    %83 = arith.divf %81, %82 : vector<8x1xf32>
    %84 = vector.broadcast %83 : vector<8x1xf32> to vector<8x32xf32>
    %85 = arith.subf %77, %84 : vector<8x32xf32>
    %86 = arith.mulf %85, %85 : vector<8x32xf32>
    %cst_33 = arith.constant dense<0.000000e+00> : vector<8xf32>
    %87 = vector.multi_reduction <add>, %86, %cst_33 [1] : vector<8x32xf32> to vector<8xf32>
    %88 = vector.shape_cast %87 : vector<8xf32> to vector<8x1xf32>
    %cst_34 = arith.constant 3.200000e+01 : f32
    %89 = vector.broadcast %cst_34 : f32 to vector<8x1xf32>
    %90 = arith.divf %88, %89 : vector<8x1xf32>
    %91 = vector.broadcast %83 : vector<8x1xf32> to vector<8x32xf32>
    %92 = arith.subf %77, %91 : vector<8x32xf32>
    %cst_35 = arith.constant 9.99999974E-6 : f32
    %93 = vector.broadcast %cst_35 : f32 to vector<8x1xf32>
    %94 = arith.addf %90, %93 : vector<8x1xf32>
    %95 = math.rsqrt %94 : vector<8x1xf32>
    %96 = vector.broadcast %95 : vector<8x1xf32> to vector<8x32xf32>
    %97 = arith.mulf %92, %96 : vector<8x32xf32>
    %98 = vector.broadcast %79 : vector<1x32xf32> to vector<8x32xf32>
    %99 = arith.mulf %97, %98 : vector<8x32xf32>
    %100 = arith.truncf %99 : vector<8x32xf32> to vector<8x32xbf16>
    %c0_36 = arith.constant 0 : index
    %c0_37 = arith.constant 0 : index
    %c0_38 = arith.constant 0 : index
    %101 = vector.load %arg9[%c0_36, %c0_37, %c0_38] : memref<1x32x64xbf16, #tpu.memory_space<vmem>>, vector<1x32x64xbf16>
    %102 = vector.shape_cast %101 : vector<1x32x64xbf16> to vector<32x64xbf16>
    %cst_39 = arith.constant dense<0.000000e+00> : vector<8x64xf32>
    %103 = tpu.matmul %100, %102, %cst_39 {dimension_numbers = #tpu.dot_dimension_numbers<[1], [0], [0], [1], [0, 0, 1, 1], [], []>} : vector<8x32xbf16>, vector<32x64xbf16>, vector<8x64xf32> -> vector<8x64xf32>
    %c0_40 = arith.constant 0 : index
    %c0_41 = arith.constant 0 : index
    %c0_42 = arith.constant 0 : index
    %104 = vector.load %arg10[%c0_40, %c0_41, %c0_42] : memref<1x1x64xf32, #tpu.memory_space<vmem>>, vector<1x1x64xf32>
    %105 = vector.shape_cast %104 : vector<1x1x64xf32> to vector<1x64xf32>
    %106 = vector.broadcast %105 : vector<1x64xf32> to vector<8x64xf32>
    %107 = arith.addf %103, %106 : vector<8x64xf32>
    %cst_43 = arith.constant 5.000000e-01 : f32
    %108 = vector.broadcast %cst_43 : f32 to vector<8x64xf32>
    %109 = arith.mulf %108, %107 : vector<8x64xf32>
    %cst_44 = arith.constant 0.707106769 : f32
    %110 = vector.broadcast %cst_44 : f32 to vector<8x64xf32>
    %111 = arith.mulf %107, %110 : vector<8x64xf32>
    %112 = math.erf %111 : vector<8x64xf32>
    %cst_45 = arith.constant 1.000000e+00 : f32
    %113 = vector.broadcast %cst_45 : f32 to vector<8x64xf32>
    %114 = arith.addf %113, %112 : vector<8x64xf32>
    %115 = arith.mulf %109, %114 : vector<8x64xf32>
    %116 = arith.truncf %115 : vector<8x64xf32> to vector<8x64xbf16>
    %c0_46 = arith.constant 0 : index
    %c0_47 = arith.constant 0 : index
    %c0_48 = arith.constant 0 : index
    %117 = vector.load %arg11[%c0_46, %c0_47, %c0_48] : memref<1x64x32xbf16, #tpu.memory_space<vmem>>, vector<1x64x32xbf16>
    %118 = vector.shape_cast %117 : vector<1x64x32xbf16> to vector<64x32xbf16>
    %cst_49 = arith.constant dense<0.000000e+00> : vector<8x32xf32>
    %119 = tpu.matmul %116, %118, %cst_49 {dimension_numbers = #tpu.dot_dimension_numbers<[1], [0], [0], [1], [0, 0, 1, 1], [], []>} : vector<8x64xbf16>, vector<64x32xbf16>, vector<8x32xf32> -> vector<8x32xf32>
    %c0_50 = arith.constant 0 : index
    %c0_51 = arith.constant 0 : index
    %c0_52 = arith.constant 0 : index
    %120 = vector.load %arg12[%c0_50, %c0_51, %c0_52] : memref<1x1x32xf32, #tpu.memory_space<vmem>>, vector<1x1x32xf32>
    %121 = vector.shape_cast %120 : vector<1x1x32xf32> to vector<1x32xf32>
    %122 = vector.broadcast %121 : vector<1x32xf32> to vector<8x32xf32>
    %123 = arith.addf %119, %122 : vector<8x32xf32>
    %124 = arith.addf %77, %123 : vector<8x32xf32>
    %c0_53 = arith.constant 0 : index
    %c0_54 = arith.constant 0 : index
    %125 = vector.load %arg14[%c0_53, %c0_54] : memref<8x32xf32, #tpu.memory_space<vmem>>, vector<8x32xf32>
    tpu.vector_store %arg14[%c0_53, %c0_54], %124 {strides = array<i32>} : memref<8x32xf32, #tpu.memory_space<vmem>>, vector<8x32xf32>,
    %c1_i32 = arith.constant 1 : i32
    %126 = arith.cmpi eq, %arg1, %c1_i32 : i32
    %127 = arith.extui %126 : i1 to i32
    %c0_i32_55 = arith.constant 0 : i32
    %128 = arith.cmpi ne, %127, %c0_i32_55 : i32
    scf.if %128 {
      %c0_56 = arith.constant 0 : index
      %c0_57 = arith.constant 0 : index
      %129 = vector.load %arg13[%c0_56, %c0_57] : memref<8x32xf32, #tpu.memory_space<vmem>>, vector<8x32xf32>
      tpu.vector_store %arg13[%c0_56, %c0_57], %124 {strides = array<i32>} : memref<8x32xf32, #tpu.memory_space<vmem>>, vector<8x32xf32>,
    } else {
    }
    return
  }
  func.func @transform_0(%arg0: i32, %arg1: i32) -> (i32, i32) {
    %c0_i32 = arith.constant 0 : i32
    %c0_i32_0 = arith.constant 0 : i32
    return %arg0, %c0_i32 : i32, i32
  }
  func.func @transform_1(%arg0: i32, %arg1: i32) -> (i32, i32, i32) {
    %c0_i32 = arith.constant 0 : i32
    %c0_i32_0 = arith.constant 0 : i32
    %c0_i32_1 = arith.constant 0 : i32
    return %arg1, %c0_i32, %c0_i32_0 : i32, i32, i32
  }
  func.func @transform_2(%arg0: i32, %arg1: i32) -> (i32, i32, i32) {
    %c0_i32 = arith.constant 0 : i32
    %c0_i32_0 = arith.constant 0 : i32
    %c0_i32_1 = arith.constant 0 : i32
    return %arg1, %c0_i32, %c0_i32_0 : i32, i32, i32
  }
  func.func @transform_3(%arg0: i32, %arg1: i32) -> (i32, i32, i32) {
    %c0_i32 = arith.constant 0 : i32
    %c0_i32_0 = arith.constant 0 : i32
    %c0_i32_1 = arith.constant 0 : i32
    return %arg1, %c0_i32, %c0_i32_0 : i32, i32, i32
  }
  func.func @transform_4(%arg0: i32, %arg1: i32) -> (i32, i32, i32) {
    %c0_i32 = arith.constant 0 : i32
    %c0_i32_0 = arith.constant 0 : i32
    %c0_i32_1 = arith.constant 0 : i32
    return %arg1, %c0_i32, %c0_i32_0 : i32, i32, i32
  }
  func.func @transform_5(%arg0: i32, %arg1: i32) -> (i32, i32, i32) {
    %c0_i32 = arith.constant 0 : i32
    %c0_i32_0 = arith.constant 0 : i32
    %c0_i32_1 = arith.constant 0 : i32
    return %arg1, %c0_i32, %c0_i32_0 : i32, i32, i32
  }
  func.func @transform_6(%arg0: i32, %arg1: i32) -> (i32, i32, i32) {
    %c0_i32 = arith.constant 0 : i32
    %c0_i32_0 = arith.constant 0 : i32
    %c0_i32_1 = arith.constant 0 : i32
    return %arg1, %c0_i32, %c0_i32_0 : i32, i32, i32
  }
  func.func @transform_7(%arg0: i32, %arg1: i32) -> (i32, i32, i32) {
    %c0_i32 = arith.constant 0 : i32
    %c0_i32_0 = arith.constant 0 : i32
    %c0_i32_1 = arith.constant 0 : i32
    return %arg1, %c0_i32, %c0_i32_0 : i32, i32, i32
  }
  func.func @transform_8(%arg0: i32, %arg1: i32) -> (i32, i32, i32) {
    %c0_i32 = arith.constant 0 : i32
    %c0_i32_0 = arith.constant 0 : i32
    %c0_i32_1 = arith.constant 0 : i32
    return %arg1, %c0_i32, %c0_i32_0 : i32, i32, i32
  }
  func.func @transform_9(%arg0: i32, %arg1: i32) -> (i32, i32, i32) {
    %c0_i32 = arith.constant 0 : i32
    %c0_i32_0 = arith.constant 0 : i32
    %c0_i32_1 = arith.constant 0 : i32
    return %arg1, %c0_i32, %c0_i32_0 : i32, i32, i32
  }
  func.func @transform_10(%arg0: i32, %arg1: i32) -> (i32, i32, i32) {
    %c0_i32 = arith.constant 0 : i32
    %c0_i32_0 = arith.constant 0 : i32
    %c0_i32_1 = arith.constant 0 : i32
    return %arg1, %c0_i32, %c0_i32_0 : i32, i32, i32
  }
  func.func @transform_11(%arg0: i32, %arg1: i32) -> (i32, i32) {
    %c0_i32 = arith.constant 0 : i32
    %c0_i32_0 = arith.constant 0 : i32
    return %arg0, %c0_i32 : i32, i32
  }
}

</mosaic_0001>

<bundles_post_ra>
// kernel: tpu_custom_call.1
= control target key start
LH: loop header
LB: loop body
LE: loop exit
PB: predicated region body
PF: predicated region fallthrough
CT: control target
= control target key end

     0   :  { %s3656_s0 = inlined_call_operand.hbm [shape: f32[16,32], index: 0, kind: input, shape index: {}]   ;;  %s3657_s1 = inlined_call_operand.vmem [shape: f32[2,1,32], index: 1, kind: input, shape index: {}]   ;;  %s3658_s2 = inlined_call_operand.vmem [shape: bf16[2,32,96], index: 2, kind: input, shape index: {}]   ;;  %s3659_s3 = inlined_call_operand.hbm [shape: f32[2,1,96], index: 3, kind: input, shape index: {}]   ;;  %s3660_s4 = inlined_call_operand.vmem [shape: bf16[2,32,32], index: 4, kind: input, shape index: {}]   ;;  %s3661_s5 = inlined_call_operand.hbm [shape: f32[2,1,32], index: 5, kind: input, shape index: {}]   ;;  %s3662_s6 = inlined_call_operand.hbm [shape: f32[2,1,32], index: 6, kind: input, shape index: {}]   ;;  %s3663_s7 = inlined_call_operand.vmem [shape: bf16[2,32,64], index: 7, kind: input, shape index: {}]   ;;  %s3664_s8 = inlined_call_operand.hbm [shape: f32[2,1,64], index: 8, kind: input, shape index: {}]   ;;  %s3665_s9 = inlined_call_operand.vmem [shape: bf16[2,64,32], index: 9, kind: input, shape index: {}]   ;;  %s3666_s10 = inlined_call_operand.vmem [shape: f32[2,1,32], index: 10, kind: input, shape index: {}]   ;;  %s3667_s11 = inlined_call_operand.hbm [shape: f32[16,32], index: 11, kind: output, shape index: {}]  }
   0x1   :  { %3689 = sst [smem:[#allocation30_spill]] %s3656_s0 }
   0x2   :  { %3690 = sst [smem:[#allocation31_spill]] %s3657_s1 }
   0x3   :  { %3691 = sst [smem:[#allocation32_spill]] %s3658_s2 }
   0x4   :  { %3692 = sst [smem:[#allocation33_spill]] %s3659_s3 }
   0x5   :  { %3693 = sst [smem:[#allocation34_spill]] %s3660_s4 }
   0x6   :  { %3694 = sst [smem:[#allocation35_spill]] %s3661_s5 }
   0x7   :  { %3695 = sst [smem:[#allocation36_spill]] %s3662_s6 }
   0x8   :  { %3696 = sst [smem:[#allocation37_spill]] %s3663_s7 }
   0x9   :  { %3697 = sst [smem:[#allocation38_spill]] %s3664_s8 }
   0xa   :  { %3698 = sst [smem:[#allocation39_spill]] %s3665_s9 }
   0xb   :  { %3699 = sst [smem:[#allocation40_spill]] %s3666_s10 }
   0xc   :  { %3700 = sst [smem:[#allocation41_spill]] %s3667_s11 }
   0xd   :  { %16 = vsyncpa [#allocation4], 0 }
   0xe   :  { %18 = vsyncpa [#allocation4 + $0x1], 0 }
   0xf   :  { %19 = vsyncpa [#allocation7], 0 }
  0x10   :  { %21 = vsyncpa [#allocation7 + $0x1], 0 }
  0x11   :  { %22 = vsyncpa [#allocation10], 0 }
  0x12   :  { %24 = vsyncpa [#allocation10 + $0x1], 0 }
  0x13   :  { %25 = vsyncpa [#allocation5], 0 }
  0x14   :  { %27 = vsyncpa [#allocation5 + $0x1], 0  ;;  %s2981_s17 = smov 0   ;;  %s2983_s18 = smov 0  }
  0x15   :  { %s2985_s19 = smov 0   ;;  %s2987_s20 = smov 0  }
  0x16   :  { %s2989_s21 = smov 0   ;;  %s2991_s22 = smov 0  }
  0x17   :  { %s2993_s23 = smov 0   ;;  %s2995_s24 = smov 0  }
  0x18   :  { %s2997_s25 = smov 0   ;;  %s2999_s26 = smov 0  }
  0x19   :  { %s3001_s27 = smov 0  }
  0x1a LB: > { %3701 = sst [smem:[#allocation17_spill]] %s2869_s19  ;;  %s42_s28 = sadd.s32 1, %s2893_s25  ;;  %s2901_s27 = sphi %s3001_s27, %s33_s27   ;;  %s2897_s26 = sphi %s2999_s26, %s3770_s26   ;;  %s2893_s25 = sphi %s2997_s25, %s3769_s25   ;;  %s2889_s24 = sphi %s2995_s24, %s3768_s24   ;;  %s2885_s23 = sphi %s2993_s23, %s3767_s23   ;;  %s2881_s22 = sphi %s2991_s22, %s3766_s22   ;;  %s2877_s21 = sphi %s2989_s21, %s3765_s21   ;;  %s2873_s20 = sphi %s2987_s20, %s3764_s20   ;;  %s2869_s19 = sphi %s2985_s19, %s3763_s19   ;;  %s2865_s18 = sphi %s2983_s18, %s3772_s18   ;;  %s2861_s17 = sphi %s2981_s17, %s3771_s17  }
  0x1b   : > { %3702 = sst [smem:[#allocation18_spill]] %s2877_s21  ;;  %p3673_p0 = scmp.eq.s32.totalorder %s2901_s27, 0 }
  0x1c   : > { %3703 = sst [smem:[#allocation19_spill]] %s2881_s22  ;;  %p3038_p1 = scmp.ge.s32.totalorder %s42_s28, 2 }
  0x1d   : > { %3704 = sst [smem:[#allocation20_spill]] %s2885_s23  ;;  %s130_s30 = sadd.s32 1, %s2869_s19 }
  0x1e   : > { %3705 = sst [smem:[#allocation21_spill]] %s2889_s24  ;;  %p137_p2 = scmp.ne.s32.totalorder %s2869_s19, %s2865_s18 }
  0x1f   : > { %3706 = sst [smem:[#allocation22_spill]] %s2893_s25  ;;  %s3774_s28 = smov (%p3038_p1, %s42_s28), 0 }
  0x20   : > { %3707 = sst [smem:[#allocation23_spill]] %s2897_s26  ;;  %p139_p4 = por %p137_p2, %p3673_p0 }
  0x21   : > { %s3708_s29 = scalar_select %p3038_p1, 1, 0 }
  0x22   : > { %3709 = sst [smem:[#allocation24_spill]] %s3774_s28  ;;  %s127_s12 = ssub.s32 %s2893_s25, %s3774_s28 }
  0x23   : > { %p3672_p5 = scmp.lt.s32.totalorder %s2901_s27, 4  ;;  %p128_p6 = scmp.eq.s32.totalorder %s127_s12, 0 }
  0x24   : > { %s3674_s13 = sand.u32 1, %s2901_s27   ;;  %s3058_s14 = sand.u32 1, %s2869_s19  }
  0x25   : > { %s3061_s15 = scalar_select %p128_p6, %s2869_s19, %s130_s30  }
  0x26   : > { %s3064_s16 = sshll.u32 %s2893_s25, 4  ;;  %s3711_s3 = sld [smem:[#allocation33_spill]] }
  0x27   : > { %3710 = sst [smem:[#allocation25_spill]] %s3061_s15  ;;  %s410_s28 = scalar_lea.vmem [#allocation6], %s3058_s14 }
  0x28   : > { %s417_s12 = sshll.u32 %s410_s28, 4  ;;  %p3077_p7 = pnand %p3672_p5, %p139_p4  ;;  %s3073_s12 = int_to_ptr.vmem [resolvable:$true] %s417_s12 }
  0x29   : > { %s3085_s11 = scalar_lea.sflag [#allocation7], %s3674_s13 }
  0x2a   : > { %s3712_s30 = scalar_select %p3077_p7, 1, 0 }
  0x2b   : > { %p3091_p11 = pneg %p3077_p7 }
  0x2c   : > { %s3070_s10 = scalar_lea.hbm %s3711_s3, %s3064_s16  ;;  %s2626_s19 = scalar_lea.hbm %s3711_s3, 32 }
  0x2d   : > { %s2621_s24 = scalar_lea.hbm %s3070_s10, 16  ;;  %p2627_p2 = scmp.lt.u32.totalorder %s3070_s10, %s3711_s3 }
  0x2e   : > { %p2622_p10 = scmp.ne.s32.totalorder %s3070_s10, %s2621_s24  ;;  %p2628_p4 = scmp.lt.u32.totalorder %s2626_s19, %s2621_s24 }
  0x2f   : > { %p2630_p5 = scmp.lt.u32.totalorder %s2621_s24, %s3070_s10 }
  0x30   : > { %p2624_p12 = pnand %p3091_p11, %p2622_p10  ;;  %p2629_p6 = por %p2628_p4, %p2627_p2 }
  0x32   : > { %p2625_p13 = pneg %p2624_p12  ;;  %p2631_p3 = por %p2630_p5, %p2629_p6 }
  0x34   : > { %p2632_p0 = pnand %p2631_p3, %p2625_p13 }
  0x36   : > { %2635 = shalt.err (!%p2632_p0)
}
  0x37   : > { %s2636_s13 = scalar_lea.vmem %s3073_s12, 16  ;;  %s2903_s15 = smov [#allocation6]  }
  0x38   : > { %p2637_p10 = scmp.ne.s32.totalorder %s3073_s12, %s2636_s13  ;;  %s2641_s28 = sshll.u32 %s2903_s15, 4  ;;  %s2642_s28 = int_to_ptr.vmem [resolvable:$false] %s2641_s28 }
  0x39   : > { %s2643_s7 = scalar_lea.vmem %s2642_s28, 32  ;;  %p2644_p9 = scmp.lt.s32.totalorder %s3073_s12, %s2642_s28 }
  0x3a   : > { %p2639_p12 = pnand %p2637_p10, %p3091_p11  ;;  %p2645_p1 = scmp.lt.s32.totalorder %s2643_s7, %s2636_s13 }
  0x3c   : > { %p2640_p8 = pneg %p2639_p12  ;;  %p2646_p2 = por %p2645_p1, %p2644_p9 }
  0x3e   : > { %p2647_p4 = pnand %p2646_p2, %p2640_p8 }
  0x40   : > { %2650 = shalt.err (!%p2647_p4)
}
  0x41   : > { %2473 = dma.hbm_to_vmem [thread:$0]  (!%p3077_p7), %s3070_s10, 16, %s3073_s12, %s3085_s11  }
  0x42   : > { %p3714_p0 = scmp.lt.s32.totalorder %s2901_s27, 5  ;;  %p3715_p3 = scmp.ge.s32.totalorder %s2901_s27, 1 }
  0x43   : > { %s3717_s6 = sld [smem:[#allocation36_spill]]  ;;  %s452_s15 = scalar_lea.vmem [#allocation9], %s3058_s14 }
  0x44   : > { %p3119_p5 = pnand %p3715_p3, %p3714_p0  ;;  %s459_s28 = sshll.u32 %s452_s15, 4  ;;  %s460_s28 = int_to_ptr.vmem [resolvable:$true] %s459_s28 }
  0x45   : > { %s3718_s7 = sand.u32 1, %s2901_s27  }
  0x46   : > { %s3716_s9 = scalar_select %p3119_p5, 1, 0 }
  0x47   : > { %s3132_s10 = scalar_lea.sflag [#allocation10], %s3718_s7 }
  0x49   : > { %s3127_s24 = scalar_lea.hbm %s3717_s6, %s3064_s16  ;;  %s2656_s19 = scalar_lea.hbm %s3717_s6, 32 }
  0x4a   : > { %s2651_s12 = scalar_lea.hbm %s3127_s24, 16  ;;  %p2657_p13 = scmp.lt.u32.totalorder %s3127_s24, %s3717_s6 }
  0x4b   : > { %p2652_p1 = scmp.ne.s32.totalorder %s3127_s24, %s2651_s12  ;;  %p2658_p6 = scmp.lt.u32.totalorder %s2656_s19, %s2651_s12 }
  0x4c   : > { %p2660_p12 = scmp.lt.u32.totalorder %s2651_s12, %s3127_s24 }
  0x4d   : > { %p2654_p8 = pnand %p2652_p1, %p3091_p11  ;;  %p2659_p10 = por %p2658_p6, %p2657_p13 }
  0x4f   : > { %p2655_p9 = pneg %p2654_p8  ;;  %p2661_p2 = por %p2660_p12, %p2659_p10 }
  0x51   : > { %p2662_p4 = pnand %p2661_p2, %p2655_p9 }
  0x53   : > { %2665 = shalt.err (!%p2662_p4)
}
  0x54   : > { %s2666_s15 = scalar_lea.vmem %s460_s28, 16  ;;  %s2904_s7 = smov [#allocation9]  }
  0x55   : > { %p2667_p0 = scmp.ne.s32.totalorder %s460_s28, %s2666_s15  ;;  %s2671_s1 = sshll.u32 %s2904_s7, 4  ;;  %s2672_s1 = int_to_ptr.vmem [resolvable:$false] %s2671_s1 }
  0x56   : > { %s2673_s3 = scalar_lea.vmem %s2672_s1, 32  ;;  %p2674_p8 = scmp.lt.s32.totalorder %s460_s28, %s2672_s1 }
  0x57   : > { %p2669_p3 = pnand %p2667_p0, %p3091_p11  ;;  %p2675_p5 = scmp.lt.s32.totalorder %s2673_s3, %s2666_s15 }
  0x59   : > { %p2670_p1 = pneg %p2669_p3  ;;  %p2676_p7 = por %p2675_p5, %p2674_p8 }
  0x5b   : > { %p2677_p6 = pnand %p2676_p7, %p2670_p1 }
  0x5d   : > { %2680 = shalt.err (!%p2677_p6)
}
  0x5e   : > { %p3719_p13 = scmp.ne.s32.totalorder %s3712_s30, 0  ;;  %s3153_s1 = sadd.s32 4294967295, %s2901_s27  }
  0x5f   : > { %s2275_s2 = sadd.s32 4294967294, %s2901_s27   ;;  %s45_s4 = sadd.s32 1, %s2897_s26 }
  0x60   : > { %2479 = dma.hbm_to_vmem [thread:$0]  (!%p3719_p13), %s3127_s24, 16, %s460_s28, %s3132_s10  }
  0x61   : > { %p3720_p7 = scmp.ne.s32.totalorder %s3708_s29, 0  ;;  %s52_s12 = sadd.s32 1, %s2881_s22 }
  0x62   : > { %p59_p5 = scmp.ne.s32.totalorder %s2881_s22, %s2877_s21  ;;  %p65_p10 = scmp.ne.s32.totalorder %s2877_s21, %s2873_s20 }
  0x63   : > { %s3776_s4 = smov (!%p3720_p7, %s45_s4), %s2897_s26  ;;  %p3721_p12 = scmp.eq.s32.totalorder %s2901_s27, 0 }
  0x64   : > { %p47_p9 = scmp.ge.s32.totalorder %s3776_s4, 2  ;;  %p66_p4 = scmp.eq.s32.totalorder %s3153_s1, 0 }
  0x65   : > { %p3167_p2 = por %p3721_p12, %p59_p5  ;;  %p3725_p3 = scmp.ne.s32.totalorder %s2865_s18, %s2861_s17 }
  0x66   : > { %s3778_s4 = smov (%p47_p9, %s3776_s4), 0  ;;  %p3177_p0 = por %p66_p4, %p65_p10 }
  0x67   : > { %3723 = sst [smem:[#allocation26_spill]] %s3778_s4  ;;  %p3184_p1 = por %p3725_p3, %p66_p4 }
  0x68   : > { %s3724_s29 = scalar_select %p3177_p0, 1, 0 }
  0x69   : > { %s3726_s28 = scalar_select %p3184_p1, 1, 0 }
  0x6a   : > { %s49_s19 = ssub.s32 %s2897_s26, %s3778_s4  ;;  %p349_p8 = scmp.eq.s32.totalorder %s3153_s1, 3 }
  0x6b   : > { %3727 = sst [smem:[#allocation27_spill]] %s3726_s28  ;;  %p50_p6 = scmp.eq.s32.totalorder %s49_s19, 0 }
  0x6c   : > { %p355_p7 = scmp.eq.s32.totalorder %s2275_s2, 3  ;;  %p3191_p9 = por %p349_p8, %p59_p5 }
  0x6d   : > { %s375_s15 = sand.u32 1, %s2881_s22   ;;  %s2279_s6 = sshll.u32 %s2897_s26, 7 }
  0x6e   : > { %s3728_s13 = scalar_select %p3191_p9, 1, 0 }
  0x6f   : > { %s3197_s7 = scalar_select %p50_p6, %s2881_s22, %s52_s12  }
  0x70   : > { %p3202_p12 = por %p355_p7, %p65_p10  ;;  %s2278_s17 = sshll.u32 %s375_s15, 3 }
  0x71   : > { %3729 = sst [smem:[#allocation28_spill]] %s3197_s7  ;;  %s3732_s0 = sld [smem:[#allocation30_spill]] }
  0x72   : > { %s3730_s3 = scalar_select %p3202_p12, 1, 0 }
  0x73   : > { %s379_s2 = scalar_lea.vmem [#allocation3], %s2278_s17  ;;  %p3733_p5 = scmp.lt.s32.totalorder %s2901_s27, 4 }
  0x74   : > { %3731 = sst [smem:[#allocation29_spill]] %s3730_s3  ;;  %s386_s19 = sshll.u32 %s379_s2, 4  ;;  %s3220_s19 = int_to_ptr.vmem [resolvable:$true] %s386_s19 }
  0x75   : > { %p3216_p4 = pnand %p3733_p5, %p3167_p2  ;;  %s3735_s5 = sld [smem:[#allocation35_spill]] }
  0x76   : > { %s376_s28 = scalar_lea.sflag [#allocation4], %s375_s15 }
  0x77   : > { %s3210_s4 = scalar_lea.hbm %s3732_s0, %s2279_s6  ;;  %p2683_p3 = pneg %p3216_p4 }
  0x78   : > { %s2681_s7 = scalar_lea.hbm %s3210_s4, 128  ;;  %s2686_s2 = scalar_lea.hbm %s3732_s0, 256 }
  0x79   : > { %p2682_p10 = scmp.ne.s32.totalorder %s3210_s4, %s2681_s7  ;;  %p2687_p6 = scmp.lt.u32.totalorder %s3210_s4, %s3732_s0 }
  0x7a   : > { %p2688_p7 = scmp.lt.u32.totalorder %s2686_s2, %s2681_s7  ;;  %p2690_p12 = scmp.lt.u32.totalorder %s2681_s7, %s3210_s4 }
  0x7b   : > { %s3226_s6 = scalar_lea.hbm %s3735_s5, %s3064_s16  ;;  %p2684_p2 = pnand %p2683_p3, %p2682_p10 }
  0x7c   : > { %p2689_p5 = por %p2688_p7, %p2687_p6 }
  0x7d   : > { %p2685_p8 = pneg %p2684_p2 }
  0x7e   : > { %p2691_p9 = por %p2690_p12, %p2689_p5 }
  0x80   : > { %p2692_p1 = pnand %p2691_p9, %p2685_p8 }
  0x82   : > { %2695 = shalt.err (!%p2692_p1)
}
  0x83   : > { %s2696_s26 = scalar_lea.vmem %s3220_s19, 128  ;;  %s2905_s15 = smov [#allocation3]  }
  0x84   : > { %p2697_p10 = scmp.ne.s32.totalorder %s3220_s19, %s2696_s26  ;;  %s2701_s23 = sshll.u32 %s2905_s15, 4  ;;  %s2702_s23 = int_to_ptr.vmem [resolvable:$false] %s2701_s23 }
  0x85   : > { %s2703_s22 = scalar_lea.vmem %s2702_s23, 256  ;;  %p2704_p13 = scmp.lt.s32.totalorder %s3220_s19, %s2702_s23 }
  0x86   : > { %p2699_p2 = pnand %p2697_p10, %p2683_p3  ;;  %p2705_p6 = scmp.lt.s32.totalorder %s2703_s22, %s2696_s26 }
  0x88   : > { %p2700_p0 = pneg %p2699_p2  ;;  %p2706_p7 = por %p2705_p6, %p2704_p13 }
  0x8a   : > { %p2707_p12 = pnand %p2706_p7, %p2700_p0 }
  0x8c   : > { %2710 = shalt.err (!%p2707_p12)
}
  0x8d   : > { %2470 = dma.hbm_to_vmem [thread:$0]  (!%p3216_p4), %s3210_s4, 128, %s3220_s19, %s376_s28  }
  0x8e   : > { %s435_s7 = scalar_lea.vmem [#allocation8], %s3058_s14  ;;  %s3736_s8 = sld [smem:[#allocation38_spill]] }
  0x8f   : > { %s442_s3 = sshll.u32 %s435_s7, 4  ;;  %s2711_s26 = scalar_lea.hbm %s3226_s6, 16  ;;  %s443_s3 = int_to_ptr.vmem [resolvable:$true] %s442_s3 }
  0x90   : > { %p2712_p13 = scmp.ne.s32.totalorder %s3226_s6, %s2711_s26  ;;  %s2716_s23 = scalar_lea.hbm %s3735_s5, 32 }
  0x91   : > { %p2717_p9 = scmp.lt.u32.totalorder %s3226_s6, %s3735_s5  ;;  %p2718_p4 = scmp.lt.u32.totalorder %s2716_s23, %s2711_s26 }
  0x92   : > { %p2714_p0 = pnand %p2712_p13, %p3091_p11  ;;  %p2720_p8 = scmp.lt.u32.totalorder %s2711_s26, %s3226_s6 }
  0x93   : > { %p2719_p3 = por %p2718_p4, %p2717_p9 }
  0x94   : > { %s3258_s2 = scalar_lea.hbm %s3736_s8, %s3064_s16  ;;  %p2715_p1 = pneg %p2714_p0 }
  0x95   : > { %p2721_p5 = por %p2720_p8, %p2719_p3 }
  0x97   : > { %p2722_p10 = pnand %p2721_p5, %p2715_p1 }
  0x99   : > { %2725 = shalt.err (!%p2722_p10)
}
  0x9a   : > { %s2726_s16 = scalar_lea.vmem %s443_s3, 16  ;;  %s2906_s4 = smov [#allocation8]  }
  0x9b   : > { %p2727_p2 = scmp.ne.s32.totalorder %s443_s3, %s2726_s16  ;;  %s2731_s19 = sshll.u32 %s2906_s4, 4  ;;  %s2732_s19 = int_to_ptr.vmem [resolvable:$false] %s2731_s19 }
  0x9c   : > { %s2733_s28 = scalar_lea.vmem %s2732_s19, 32  ;;  %p2734_p12 = scmp.lt.s32.totalorder %s443_s3, %s2732_s19 }
  0x9d   : > { %p2729_p6 = pnand %p2727_p2, %p3091_p11  ;;  %p2735_p13 = scmp.lt.s32.totalorder %s2733_s28, %s2726_s16 }
  0x9f   : > { %p2730_p7 = pneg %p2729_p6  ;;  %p2736_p0 = por %p2735_p13, %p2734_p12 }
  0xa1   : > { %p2737_p4 = pnand %p2736_p0, %p2730_p7 }
  0xa3   : > { %2740 = shalt.err (!%p2737_p4)
}
  0xa4   : > { %p3737_p9 = scmp.ne.s32.totalorder %s3712_s30, 0  ;;  %s477_s0 = scalar_lea.vmem [#allocation11], %s3058_s14 }
  0xa5   : > { %s484_s7 = sshll.u32 %s477_s0, 4  ;;  %s2741_s24 = scalar_lea.hbm %s3258_s2, 16  ;;  %s485_s7 = int_to_ptr.vmem [resolvable:$true] %s484_s7 }
  0xa6   : > { %2476 = dma.hbm_to_vmem [thread:$0]  (!%p3737_p9), %s3226_s6, 16, %s443_s3, %s3085_s11  }
  0xa7   : > { %p2742_p1 = scmp.ne.s32.totalorder %s3258_s2, %s2741_s24  ;;  %s2746_s12 = scalar_lea.hbm %s3736_s8, 32 }
  0xa8   : > { %p2747_p5 = scmp.lt.u32.totalorder %s3258_s2, %s3736_s8  ;;  %p2748_p10 = scmp.lt.u32.totalorder %s2746_s12, %s2741_s24 }
  0xa9   : > { %p2744_p3 = pnand %p2742_p1, %p3091_p11  ;;  %p2750_p6 = scmp.lt.u32.totalorder %s2741_s24, %s3258_s2 }
  0xaa   : > { %p2749_p2 = por %p2748_p10, %p2747_p5 }
  0xab   : > { %p2745_p8 = pneg %p2744_p3 }
  0xac   : > { %p2751_p7 = por %p2750_p6, %p2749_p2 }
  0xae   : > { %p2752_p12 = pnand %p2751_p7, %p2745_p8 }
  0xb0   : > { %2755 = shalt.err (!%p2752_p12)
}
  0xb1   : > { %s2756_s14 = scalar_lea.vmem %s485_s7, 16  ;;  %s2907_s11 = smov [#allocation11]  }
  0xb2   : > { %p2757_p13 = scmp.ne.s32.totalorder %s485_s7, %s2756_s14  ;;  %s2761_s6 = sshll.u32 %s2907_s11, 4  ;;  %s2762_s6 = int_to_ptr.vmem [resolvable:$false] %s2761_s6 }
  0xb3   : > { %s2763_s3 = scalar_lea.vmem %s2762_s6, 32  ;;  %p2764_p1 = scmp.lt.s32.totalorder %s485_s7, %s2762_s6 }
  0xb4   : > { %p2759_p0 = pnand %p2757_p13, %p3091_p11  ;;  %p2765_p3 = scmp.lt.s32.totalorder %s2763_s3, %s2756_s14 }
  0xb6   : > { %p2760_p4 = pneg %p2759_p0  ;;  %p2766_p9 = por %p2765_p3, %p2764_p1 }
  0xb8   : > { %p2767_p5 = pnand %p2766_p9, %p2760_p4 }
  0xba   : > { %2770 = shalt.err (!%p2767_p5)
}
  0xbb   : > { %p3738_p10 = scmp.ne.s32.totalorder %s3712_s30, 0  ;;  %p3739_p8 = scmp.ne.s32.totalorder %s3716_s9, 0 }
  0xbc   : > { %s3300_s25 = sand.u32 (!%p3739_p8), 1, %s2877_s21   ;;  %p3740_p11 = scmp.ne.s32.totalorder (!%p3739_p8), %s3724_s29, 0 }
  0xbd   : > { %2482 = dma.hbm_to_vmem [thread:$0]  (!%p3738_p10), %s3258_s2, 16, %s485_s7, %s3132_s10  }
  0xbe   : > { %507 = sbr.rel (%p3739_p8) target bundleno = 2963 (0xb93), region = 64  ;;  %s2285_s22 = sshll.u32 (!%p3739_p8), %s3300_s25, 3 }
  0xbf   : > { %s510_s16 = scalar_lea.sflag (!%p3739_p8), [#allocation4], %s3300_s25  ;;  %s513_s4 = scalar_lea.vmem (!%p3739_p8), [#allocation3], %s2285_s22 }
  0xc5   : > { %2844 = dma.done.wait (%p3740_p11), %s510_s16, 128  }
  0xc6   : > { %2846 = vsyncadd (%p3740_p11), %s510_s16, 4294967168  ;;  %s3741_s30 = sld [smem:[#allocation27_spill]]  ;;  %s518_s10 = sand.u32 1, %s3153_s1  }
  0xc7   : > { %s3310_s9 = sand.u32 1, %s2865_s18   ;;  %s519_s2 = scalar_lea.sflag [#allocation7], %s518_s10 }
  0xcc   : > { %p3742_p9 = scmp.ne.s32.totalorder %s3741_s30, 0 }
  0xce   : > { %2848 = dma.done.wait (%p3742_p9), %s519_s2, 32  }
  0xcf   : > { %2850 = vsyncadd (%p3742_p9), %s519_s2, 4294967264  ;;  %s535_s29 = scalar_lea.sflag [#allocation10], %s518_s10 }
  0xd0   : > { %2852 = dma.done.wait (%p3742_p9), %s535_s29, 32  }
  0xd1   : > { %2854 = vsyncadd (%p3742_p9), %s535_s29, 4294967264  ;;  %s3743_s1 = sld [smem:[#allocation20_spill]]  ;;  %s3745_s11 = sld [smem:[#allocation32_spill]] }
  0xd2   : > { %s3746_s30 = sld [smem:[#allocation34_spill]]  ;;  %s3747_s0 = sld [smem:[#allocation37_spill]] }
  0xd3   : > { %s3748_s5 = sld [smem:[#allocation39_spill]]  ;;  %s3749_s23 = sld [smem:[#allocation40_spill]] }
  0xd4   : > { %s3356_s21 = scalar_lea.vmem [#allocation12], %s2285_s22 }
  0xd7   : > { %p626_p2 = scmp.lt.s32.totalorder %s3743_s1, 1  ;;  %p2295_p6 = scmp.ne.s32.totalorder %s3743_s1, 0 }
  0xd8   : > { %v657_v0 = vld [vmem:[%s513_s4] sm:$0xff] (!%p2295_p6)  ;;  %vm658_vm0 = vcmask (!%p2295_p6), 261120  }
  0xd9   : > { %s3325_s7 = scalar_select %p626_p2, %s3743_s1, 1 }
  0xda   : > { %656 = sbr.rel (%p2295_p6) target bundleno = 225 (0xe1), region = 88  ;;  %659 = vst.msk [vmem:[#allocation2] sm:$0xff] (!%p2295_p6), %vm658_vm0, %v657_v0 }
  0xdb   : > { %s2337_s15 = sshll.u32 %s3325_s7, 4  ;;  %s2340_s24 = sshll.u32 %s3325_s7, 5 }
  0xdc   : > { %s633_s6 = scalar_lea.vmem %s3745_s11, %s2337_s15  ;;  %s3338_s10 = scalar_lea.vmem %s3746_s30, %s2337_s15 }
  0xdd   : > { %s3343_s28 = scalar_lea.vmem %s3747_s0, %s2337_s15  ;;  %s3349_s26 = scalar_lea.vmem %s3748_s5, %s2340_s24 }
  0xde   : > { %s651_s14 = scalar_lea.vmem %s3749_s23, %s3325_s7  ;;  %s545_s11 = scalar_lea.vmem [#allocation11], %s3310_s9 }
  0xe1 PF: > { %v3359_v1 = vld [vmem:[#allocation2] sm:$0xff]  ;;  %vm662_vm1 = vcmask 261120   ;;  %v2908_v9 = vmov 0.0   ;;  %vm2909_vm2 = vmmov 0   ;;  %v2590_v10 = vld [vmem:[%s633_s6 + $0x8] sm:$0xff]   ;;  %s3750_s22 = sld [smem:[#allocation31_spill]]  ;;  %v766_v30 = vlaneseq }
  0xe2   : > { %v663_v2 = vsel %vm662_vm1, %v3359_v1, 0.0  ;;  %v2589_v8 = vld [vmem:[%s633_s6] sm:$0xff]   ;;  %2371 = vmatprep.subr.bf16.mxu0 %v2908_v9  ;;  %2375 = vmatprep.mubr.msk.bf16.mxu0 %vm2909_vm2, %v2908_v9  ;;  %s3752_s19 = scalar_lea.vmem [#allocation6], %s3310_s9  ;;  %s2910_s0 = smov 104   ;;  %v2914_v28 = vmov 1983009808  }
  0xe3   : > { %664 = vadd.xlane.f32.xlu0 %v663_v2  ;;  %2372 = vmatpush3.bf16.msra.mxu0 %v2589_v8  ;;  %v2297_v19 = vld [vmem:[%s3752_s19] ss:$0 sm:$0xff]  ;;  %s2911_s1 = smov 120   ;;  %s2912_s12 = smov 112   ;;  %v764_v29 = vunpack.c.l.s4 %v2914_v28  ;;  %v3399_v32 = vshrl.u32 %v766_v30, 7  ;;  %vm1201_vm3 = vcmask 64512  }
  0xe4   : > { %2379 = vmatprep.subr.bf16.mxu1 %v2908_v9  ;;  %2373 = vmatprep.subr.bf16.mxu0 %v2908_v9  ;;  %s2913_s15 = smov 96   ;;  %v2915_v34 = vmov 1934713408   ;;  %s2916_s6 = smov 64   ;;  %vm1452_vm5 = vcmask 1043456   ;;  %vm1783_vm6 = vcmask 130048  }
  0xe5   : > { %2381 = vmatprep.mubr.msk.bf16.mxu1 %vm2909_vm2, %v2908_v9  ;;  %v765_v31 = vunpack.c.0.s8 %v764_v29  ;;  %v796_v35 = vunpack.c.l.s4 %v2915_v34  ;;  %s2917_s3 = smov 16   ;;  %s2918_s16 = smov 8   ;;  %vm1785_vm7 = vcmask 195584   ;;  %vm1988_vm8 = vcmask 523264  }
  0xe6   : > { %s2919_s30 = smov 24   ;;  %s3754_s2 = scalar_lea.vmem [#allocation9], %s3310_s9 }
  0xe7   : > { %2374 = vmatpush3.bf16.msra.mxu0 %v2590_v10  ;;  %s3751_s4 = scalar_lea.vmem %s3750_s22, %s3325_s7  ;;  %v3406_v38 = vsub.s32 %v765_v31, %v3399_v32  ;;  %v797_v42 = vunpack.c.0.s8 %v796_v35 }
  0xe8   : > { %2385 = vmatprep.subr.bf16.mxu0 %v2908_v9  ;;  %v2296_v15 = vld [vmem:[%s3751_s4] ss:$0 sm:$0xff] }
  0xe9   : > { %v3417_v48 = vsub.s32 %v797_v42, %v3399_v32 }
 0x170   : > { %v665_v3 = vpop.xlane.xlu0 %664 }
 0x171   : > { %v667_v4 = vmul.f32 0.03125, %v665_v3 }
 0x173   : > { %v668_v5 = vsub.f32 %v3359_v1, %v667_v4 }
 0x175   : > { %v669_v6 = vmul.f32 %v668_v5, %v668_v5 }
 0x177   : > { %v670_v7 = vsel %vm662_vm1, %v669_v6, 0.0 }
 0x178   : > { %671 = vadd.xlane.f32.xlu0 %v670_v7 }
 0x205   : > { %v672_v11 = vpop.xlane.xlu0 %671 }
 0x206   : > { %v673_v12 = vmul.f32 0.03125, %v672_v11 }
 0x208   : > { %v674_v13 = vadd.f32 1e-05, %v673_v12 }
 0x20a   : > { %2599 = vrsqrt.f32 %v674_v13 }
 0x214   : > { %v2600_v14 = vpop.eup %2599 }
 0x215   : > { %v676_v16 = vmul.f32 %v2600_v14, %v668_v5 }
 0x217   : > { %v683_v17 = vmul.f32 %v2296_v15, %v676_v16 }
 0x219   : > { %v684_v18 = vpack.c.bf16 %v683_v17, %v683_v17 }
 0x21b   : > { %2376 = vmatmul.mubr.msk.bf16.vlgmr.msra.gmra.mrb[0].mxu0 %vm662_vm1, %v684_v18 }
 0x21c   : > { %2387 = vmatprep.mubr.msk.bf16.mxu0 %vm2909_vm2, %v2908_v9 }
 0x2ee   : > { %v745_v20 = vpop.f32.mrb[0].mxu0 }
 0x2ef   : > { %v3383_v21 = vadd.f32 %v2297_v19, %v745_v20  ;;  %v2377_v22 = vpop.f32.mrb[1].mxu0 }
 0x2f0   : > { %v748_v23 = vpop.f32.mrb[2].mxu0 }
 0x2f1   : > { %758 = vrot.lane.b32.xlu0 %v3383_v21, %s2910_s0  ;;  %752 = vrot.lane.b32.xlu1 %v3383_v21, %s2911_s1  ;;  %v2378_v24 = vpop.f32.mrb[3].mxu0 }
 0x2f5   : > { %755 = vrot.lane.b32.xlu1 %v3383_v21, %s2912_s12 }
 0x2f9   : > { %897 = vrot.lane.b32.xlu1 %v3383_v21, %s2913_s15 }
 0x363   : > { %v3389_v25 = vpop.permute.xlu1 %752  ;;  %v3395_v27 = vpop.permute.xlu0 %758 }
 0x364   : > { %899 = vrot.lane.b32.xlu1 %v3389_v25, %s2913_s15  ;;  %v777_v39 = vcombine.low %v3389_v25, %v3395_v27  ;;  %v778_v40 = vcombine.high %v3389_v25, %v3395_v27 }
 0x366   : > { %v785_v45 = vrot.slane %v777_v39, %v3406_v38  ;;  %v792_v46 = vrot.slane %v778_v40, %v3406_v38 }
 0x367   : > { %v3392_v26 = vpop.permute.xlu1 %755 }
 0x368   : > { %901 = vrot.lane.b32.xlu1 %v3392_v26, %s2913_s15  ;;  %v761_v36 = vcombine.low %v3383_v21, %v3392_v26  ;;  %v762_v37 = vcombine.high %v3383_v21, %v3392_v26 }
 0x36a   : > { %v769_v43 = vrot.slane %v761_v36, %v3406_v38  ;;  %v776_v44 = vrot.slane %v762_v37, %v3406_v38 }
 0x36b   : > { %v898_v33 = vpop.permute.xlu1 %897 }
 0x36c   : > { %903 = vrot.lane.b32.xlu1 %v3395_v27, %s2913_s15  ;;  %v793_v49 = vcombine.low %v769_v43, %v785_v45  ;;  %v794_v50 = vcombine.high %v769_v43, %v785_v45  ;;  %v809_v51 = vcombine.low %v776_v44, %v792_v46  ;;  %v810_v52 = vcombine.high %v776_v44, %v792_v46 }
 0x36e   : > { %v801_v58 = vrot.slane %v793_v49, %v3417_v48  ;;  %v808_v59 = vrot.slane %v794_v50, %v3417_v48  ;;  %v817_v60 = vrot.slane %v809_v51, %v3417_v48  ;;  %v824_v61 = vrot.slane %v810_v52, %v3417_v48 }
 0x370   : > { %v829_v7 = vcombine.low %v801_v58, %v808_v59  ;;  %v2301_v8 = vcombine.high %v801_v58, %v808_v59  ;;  %v845_v10 = vcombine.low %v817_v60, %v824_v61  ;;  %v2302_v11 = vcombine.high %v817_v60, %v824_v61 }
 0x372   : > { %v836_v20 = vrot.slane %v829_v7, %v3406_v38  ;;  %v844_v22 = vrot.slane %v2301_v8, %v3406_v38  ;;  %v852_v23 = vrot.slane %v845_v10, %v3406_v38  ;;  %v860_v24 = vrot.slane %v2302_v11, %v3406_v38 }
 0x373   : > { %v1389_v10 = vand.u32 127, %v766_v30 }
 0x374   : > { %v877_v42 = vcombine.low %v852_v23, %v860_v24 }
 0x375   : > { %vm1390_vm4 = vcmp.ge.s32.totalorder %v3399_v32, %v1389_v10 }
 0x376   : > { %v885_v51 = vrot.slane %v877_v42, %v3417_v48 }
 0x3d6   : > { %v900_v41 = vpop.permute.xlu1 %899 }
 0x3da   : > { %v902_v47 = vpop.permute.xlu1 %901 }
 0x3db   : > { %v909_v53 = vcombine.low %v898_v33, %v902_v47  ;;  %v910_v54 = vcombine.high %v898_v33, %v902_v47 }
 0x3dd   : > { %v917_v62 = vrot.slane %v909_v53, %v3406_v38  ;;  %v924_v63 = vrot.slane %v910_v54, %v3406_v38 }
 0x3de   : > { %v904_v55 = vpop.permute.xlu1 %903 }
 0x3df   : > { %v925_v56 = vcombine.low %v900_v41, %v904_v55  ;;  %v926_v57 = vcombine.high %v900_v41, %v904_v55  ;;  %v861_v41 = vcombine.low %v836_v20, %v844_v22 }
 0x3e1   : > { %v933_v0 = vrot.slane %v925_v56, %v3406_v38  ;;  %v940_v2 = vrot.slane %v926_v57, %v3406_v38  ;;  %v869_v50 = vrot.slane %v861_v41, %v3417_v48  ;;  %v862_v56 = vcombine.high %v836_v20, %v844_v22 }
 0x3e2   : > { %v878_v57 = vcombine.high %v852_v23, %v860_v24 }
 0x3e3   : > { %v941_v3 = vcombine.low %v917_v62, %v933_v0  ;;  %v942_v4 = vcombine.high %v917_v62, %v933_v0  ;;  %v957_v5 = vcombine.low %v924_v63, %v940_v2  ;;  %v958_v6 = vcombine.high %v924_v63, %v940_v2 }
 0x3e4   : > { %v893_v58 = vcombine.low %v869_v50, %v885_v51  ;;  %v894_v59 = vcombine.high %v869_v50, %v885_v51  ;;  %v876_v0 = vrot.slane %v862_v56, %v3417_v48  ;;  %v892_v2 = vrot.slane %v878_v57, %v3417_v48 }
 0x3e5   : > { %v949_v12 = vrot.slane %v941_v3, %v3417_v48  ;;  %v956_v13 = vrot.slane %v942_v4, %v3417_v48  ;;  %v965_v14 = vrot.slane %v957_v5, %v3417_v48  ;;  %v972_v15 = vrot.slane %v958_v6, %v3417_v48 }
 0x3e6   : > { %v1193_v62 = vpack.c.bf16 %v893_v58, %v893_v58  ;;  %v1194_v63 = vpack.c.bf16 %v894_v59, %v894_v59  ;;  %v895_v5 = vcombine.low %v876_v0, %v892_v2  ;;  %v896_v6 = vcombine.high %v876_v0, %v892_v2 }
 0x3e7   : > { %v977_v16 = vcombine.low %v949_v12, %v956_v13  ;;  %v2303_v17 = vcombine.high %v949_v12, %v956_v13  ;;  %v993_v18 = vcombine.low %v965_v14, %v972_v15  ;;  %v2304_v19 = vcombine.high %v965_v14, %v972_v15 }
 0x3e8   : > { %v1195_v7 = vpack.c.bf16 %v895_v5, %v895_v5  ;;  %v1196_v8 = vpack.c.bf16 %v896_v6, %v896_v6 }
 0x3e9   : > { %v984_v28 = vrot.slane %v977_v16, %v3406_v38  ;;  %v992_v29 = vrot.slane %v2303_v17, %v3406_v38  ;;  %v1000_v31 = vrot.slane %v993_v18, %v3406_v38  ;;  %v1008_v33 = vrot.slane %v2304_v19, %v3406_v38 }
 0x3eb   : > { %v1009_v34 = vcombine.low %v984_v28, %v992_v29  ;;  %v1025_v35 = vcombine.low %v1000_v31, %v1008_v33  ;;  %v1010_v36 = vcombine.high %v984_v28, %v992_v29  ;;  %v1026_v37 = vcombine.high %v1000_v31, %v1008_v33 }
 0x3ed   : > { %v1017_v39 = vrot.slane %v1009_v34, %v3417_v48  ;;  %v1033_v40 = vrot.slane %v1025_v35, %v3417_v48  ;;  %v1024_v45 = vrot.slane %v1010_v36, %v3417_v48  ;;  %v1040_v46 = vrot.slane %v1026_v37, %v3417_v48 }
 0x3ef   : > { %v1041_v43 = vcombine.low %v1017_v39, %v1033_v40  ;;  %v1042_v44 = vcombine.high %v1017_v39, %v1033_v40  ;;  %v1043_v54 = vcombine.low %v1024_v45, %v1040_v46  ;;  %v1044_v55 = vcombine.high %v1024_v45, %v1040_v46 }
 0x3f1   : > { %v1197_v47 = vpack.c.bf16 %v1041_v43, %v1041_v43  ;;  %v1198_v49 = vpack.c.bf16 %v1042_v44, %v1042_v44  ;;  %v1199_v60 = vpack.c.bf16 %v1043_v54, %v1043_v54  ;;  %v1200_v61 = vpack.c.bf16 %v1044_v55, %v1044_v55 }
 0x3f3   : > { %v1206_v52 = vsel %vm1201_vm3, %v1197_v47, 0  ;;  %v1252_v53 = vsel %vm1201_vm3, %v1198_v49, 0  ;;  %v1298_v3 = vsel %vm1201_vm3, %v1199_v60, 0  ;;  %v1344_v4 = vsel %vm1201_vm3, %v1200_v61, 0 }
 0x3f4   : > { %2380 = vmatpush3.bf16.xpose.msra.mxu1 %v1206_v52  ;;  %2386 = vmatpush3.bf16.xpose.msra.mxu0 %v1252_v53 }
 0x3f5   : > { %2391 = vmatprep.subr.bf16.mxu1 %v2908_v9  ;;  %2397 = vmatprep.subr.bf16.mxu0 %v2908_v9 }
 0x3fb   : > { %2382 = vmatmul.mubr.msk.bf16.vlgmr.msra.gmra.mrb[0].mxu1 %vm1201_vm3, %v1193_v62  ;;  %2388 = vmatmul.mubr.msk.bf16.vlgmr.msra.gmra.mrb[4].mxu0 %vm1201_vm3, %v1194_v63 }
 0x3fc   : > { %2392 = vmatpush3.bf16.xpose.msra.mxu1 %v1298_v3  ;;  %2398 = vmatpush3.bf16.xpose.msra.mxu0 %v1344_v4 }
 0x3fd   : > { %2393 = vmatprep.mubr.msk.bf16.mxu1 %vm2909_vm2, %v2908_v9  ;;  %2399 = vmatprep.mubr.msk.bf16.mxu0 %vm2909_vm2, %v2908_v9 }
 0x3fe   : > { %2403 = vmatprep.subr.bf16.mxu1 %v2908_v9  ;;  %2409 = vmatprep.subr.bf16.mxu0 %v2908_v9 }
 0x403   : > { %2394 = vmatmul.mubr.msk.bf16.vlgmr.msra.gmra.mrb[4].mxu1 %vm1201_vm3, %v1195_v7  ;;  %2400 = vmatmul.mubr.msk.bf16.vlgmr.msra.gmra.mrb[8].mxu0 %vm1201_vm3, %v1196_v8 }
 0x404   : > { %2405 = vmatprep.mubr.msk.bf16.mxu1 %vm2909_vm2, %v2908_v9  ;;  %2411 = vmatprep.mubr.msk.bf16.mxu0 %vm2909_vm2, %v2908_v9 }
 0x4ce   : > { %v1242_v11 = vpop.f32.mrb[0].mxu1  ;;  %v1288_v12 = vpop.f32.mrb[4].mxu0 }
 0x4cf   : > { %v1393_v13 = vsel %vm1390_vm4, %v1242_v11, -1e+30  ;;  %v1394_v14 = vsel %vm1390_vm4, %v1288_v12, -1e+30  ;;  %v2383_v15 = vpop.f32.mrb[1].mxu1  ;;  %v2389_v16 = vpop.f32.mrb[5].mxu0 }
 0x4d0   : > { %v1245_v17 = vpop.f32.mrb[2].mxu1  ;;  %v1291_v18 = vpop.f32.mrb[6].mxu0  ;;  %v1397_v19 = vsel %vm1201_vm3, %v1393_v13, -inf  ;;  %v1400_v20 = vsel %vm1201_vm3, %v1394_v14, -inf }
 0x4d1   : > { %1398 = vmax.xlane.f32.xlu1 %v1397_v19  ;;  %v2384_v30 = vpop.f32.mrb[3].mxu1  ;;  %1401 = vmax.xlane.f32.xlu0 %v1400_v20  ;;  %v2390_v22 = vpop.f32.mrb[7].mxu0 }
 0x4d6   : > { %v1334_v23 = vpop.f32.mrb[4].mxu1  ;;  %v1380_v24 = vpop.f32.mrb[8].mxu0 }
 0x4d7   : > { %v1395_v28 = vsel %vm1390_vm4, %v1334_v23, -1e+30  ;;  %v1396_v29 = vsel %vm1390_vm4, %v1380_v24, -1e+30  ;;  %v2395_v31 = vpop.f32.mrb[5].mxu1  ;;  %v2401_v33 = vpop.f32.mrb[9].mxu0 }
 0x4d8   : > { %v1337_v34 = vpop.f32.mrb[6].mxu1  ;;  %v1383_v35 = vpop.f32.mrb[10].mxu0  ;;  %v1403_v36 = vsel %vm1201_vm3, %v1395_v28, -inf  ;;  %v1406_v37 = vsel %vm1201_vm3, %v1396_v29, -inf }
 0x4d9   : > { %1404 = vmax.xlane.f32.xlu1 %v1403_v36  ;;  %v2396_v39 = vpop.f32.mrb[7].mxu1  ;;  %1407 = vmax.xlane.f32.xlu0 %v1406_v37  ;;  %v2402_v40 = vpop.f32.mrb[11].mxu0 }
 0x4ea   : > { %1045 = vrot.lane.b32.xlu1 %v3383_v21, %s2916_s6 }
 0x55e   : > { %v1399_v41 = vpop.xlane.xlu1 %1398  ;;  %v1402_v42 = vpop.xlane.xlu0 %1401 }
 0x55f   : > { %v1409_v43 = vsub.f32 %v1393_v13, %v1399_v41  ;;  %v1410_v32 = vsub.f32 %v1394_v14, %v1402_v42 }
 0x561   : > { %v1413_v44 = vmul.f32 1.442695, %v1409_v43  ;;  %v1415_v45 = vmul.f32 1.442695, %v1410_v32 }
 0x563   : > { %2601 = vpow2.f32 %v1413_v44 }
 0x564   : > { %2603 = vpow2.f32 %v1415_v45 }
 0x566   : > { %v1405_v21 = vpop.xlane.xlu1 %1404  ;;  %v1408_v52 = vpop.xlane.xlu0 %1407 }
 0x567   : > { %v1411_v51 = vsub.f32 %v1395_v28, %v1405_v21  ;;  %v1412_v53 = vsub.f32 %v1396_v29, %v1408_v52 }
 0x569   : > { %v1417_v54 = vmul.f32 1.442695, %v1411_v51  ;;  %v1419_v55 = vmul.f32 1.442695, %v1412_v53 }
 0x56b   : > { %2605 = vpow2.f32 %v1417_v54 }
 0x56c   : > { %2607 = vpow2.f32 %v1419_v55 }
 0x56d   : > { %v3482_v46 = vpop.eup %2601 }
 0x56e   : > { %v3484_v47 = vpop.eup %2603  ;;  %v1421_v49 = vsel %vm1201_vm3, %v3482_v46, 0.0 }
 0x56f   : > { %1422 = vadd.xlane.f32.xlu1 %v1421_v49  ;;  %v1424_v50 = vsel %vm1201_vm3, %v3484_v47, 0.0 }
 0x570   : > { %1425 = vadd.xlane.f32.xlu0 %v1424_v50 }
 0x575   : > { %v3493_v56 = vpop.eup %2605 }
 0x576   : > { %v3495_v57 = vpop.eup %2607  ;;  %v1427_v58 = vsel %vm1201_vm3, %v3493_v56, 0.0 }
 0x580   : > { %1049 = vrot.lane.b32.xlu1 %v3392_v26, %s2916_s6  ;;  %v1430_v26 = vsel %vm1201_vm3, %v3495_v57, 0.0 }
 0x584   : > { %1051 = vrot.lane.b32.xlu1 %v3395_v27, %s2916_s6 }
 0x586   : > { %1047 = vrot.lane.b32.xlu0 %v3389_v25, %s2916_s6  ;;  %v1046_v25 = vpop.permute.xlu1 %1045 }
 0x5a5   : > { %1428 = vadd.xlane.f32.xlu0 %v1427_v58 }
 0x5a8   : > { %1431 = vadd.xlane.f32.xlu1 %v1430_v26 }
 0x5fc   : > { %v1423_v27 = vpop.xlane.xlu1 %1422 }
 0x5fd   : > { %v1426_v59 = vpop.xlane.xlu0 %1425  ;;  %2609 = vrcp.f32 %v1423_v27 }
 0x5fe   : > { %2611 = vrcp.f32 %v1426_v59 }
 0x600   : > { %v1050_v60 = vpop.permute.xlu1 %1049 }
 0x601   : > { %v1057_v61 = vcombine.low %v1046_v25, %v1050_v60  ;;  %v1058_v62 = vcombine.high %v1046_v25, %v1050_v60  ;;  %v1048_v63 = vpop.permute.xlu0 %1047 }
 0x603   : > { %v1065_v4 = vrot.slane %v1057_v61, %v3406_v38  ;;  %v1072_v5 = vrot.slane %v1058_v62, %v3406_v38 }
 0x604   : > { %v1052_v0 = vpop.permute.xlu1 %1051 }
 0x605   : > { %v1073_v2 = vcombine.low %v1048_v63, %v1052_v0  ;;  %v1074_v3 = vcombine.high %v1048_v63, %v1052_v0  ;;  %v2591_v63 = vld [vmem:[%s3338_s10] sm:$0xff]  }
 0x607   : > { %v1081_v6 = vrot.slane %v1073_v2, %v3406_v38  ;;  %v1088_v7 = vrot.slane %v1074_v3, %v3406_v38  ;;  %v2610_v36 = vpop.eup %2609 }
 0x608   : > { %v2612_v40 = vpop.eup %2611  ;;  %v1437_v44 = vmul.f32 %v2610_v36, %v3482_v46 }
 0x609   : > { %v1089_v8 = vcombine.low %v1065_v4, %v1081_v6  ;;  %v1090_v10 = vcombine.high %v1065_v4, %v1081_v6  ;;  %v1105_v11 = vcombine.low %v1072_v5, %v1088_v7  ;;  %v1106_v12 = vcombine.high %v1072_v5, %v1088_v7 }
 0x60a   : > { %v1438_v45 = vmul.f32 %v2612_v40, %v3484_v47  ;;  %v1441_v54 = vpack.c.bf16 %v1437_v44, %v1437_v44 }
 0x60b   : > { %v1097_v13 = vrot.slane %v1089_v8, %v3417_v48  ;;  %v1104_v14 = vrot.slane %v1090_v10, %v3417_v48  ;;  %v1113_v15 = vrot.slane %v1105_v11, %v3417_v48  ;;  %v1120_v16 = vrot.slane %v1106_v12, %v3417_v48 }
 0x60c   : > { %v1442_v55 = vpack.c.bf16 %v1438_v45, %v1438_v45 }
 0x60d   : > { %v1125_v17 = vcombine.low %v1097_v13, %v1104_v14  ;;  %v2305_v18 = vcombine.high %v1097_v13, %v1104_v14  ;;  %v1141_v19 = vcombine.low %v1113_v15, %v1120_v16  ;;  %v2306_v20 = vcombine.high %v1113_v15, %v1120_v16 }
 0x60f   : > { %v1132_v30 = vrot.slane %v1125_v17, %v3406_v38  ;;  %v1140_v22 = vrot.slane %v2305_v18, %v3406_v38  ;;  %v1148_v23 = vrot.slane %v1141_v19, %v3406_v38  ;;  %v1156_v24 = vrot.slane %v2306_v20, %v3406_v38 }
 0x611   : > { %v1157_v28 = vcombine.low %v1132_v30, %v1140_v22  ;;  %v1158_v29 = vcombine.high %v1132_v30, %v1140_v22  ;;  %v1173_v31 = vcombine.low %v1148_v23, %v1156_v24  ;;  %v1174_v33 = vcombine.high %v1148_v23, %v1156_v24 }
 0x613   : > { %v1165_v34 = vrot.slane %v1157_v28, %v3417_v48  ;;  %v1172_v35 = vrot.slane %v1158_v29, %v3417_v48  ;;  %v1181_v37 = vrot.slane %v1173_v31, %v3417_v48  ;;  %v1188_v39 = vrot.slane %v1174_v33, %v3417_v48  ;;  %v2592_v33 = vld [vmem:[%s3338_s10 + $0x8] sm:$0xff]   ;;  %s3753_s10 = scalar_lea.vmem [#allocation8], %s3310_s9  ;;  %s3756_s9 = sld [smem:[#allocation20_spill]] }
 0x615   : > { %v1189_v41 = vcombine.low %v1165_v34, %v1181_v37  ;;  %v1190_v42 = vcombine.high %v1165_v34, %v1181_v37  ;;  %v1191_v43 = vcombine.low %v1172_v35, %v1188_v39  ;;  %v1192_v32 = vcombine.high %v1172_v35, %v1188_v39 }
 0x617   : > { %v1445_v49 = vpack.c.bf16 %v1189_v41, %v1189_v41  ;;  %v1446_v50 = vpack.c.bf16 %v1190_v42, %v1190_v42  ;;  %v1447_v52 = vpack.c.bf16 %v1191_v43, %v1191_v43  ;;  %v1448_v53 = vpack.c.bf16 %v1192_v32, %v1192_v32 }
 0x619   : > { %v1454_v21 = vsel %vm1452_vm5, %v1445_v49, 0  ;;  %v1500_v51 = vsel %vm1452_vm5, %v1446_v50, 0  ;;  %v1546_v46 = vsel %vm1452_vm5, %v1447_v52, 0  ;;  %v1592_v47 = vsel %vm1452_vm5, %v1448_v53, 0  ;;  %p2332_p7 = scmp.ne.s32.totalorder %s3756_s9, 1 }
 0x61a   : > { %2404 = vmatpush3.bf16.msra.mxu1 %v1454_v21  ;;  %2410 = vmatpush3.bf16.msra.mxu0 %v1500_v51 }
 0x61b   : > { %2415 = vmatprep.subr.bf16.mxu1 %v2908_v9  ;;  %2421 = vmatprep.subr.bf16.mxu0 %v2908_v9 }
 0x61d   : > { %2406 = vmatmul.mubr.msk.bf16.vlgmr.msra.gmra.mrb[8].mxu1 %vm1201_vm3, %v1441_v54  ;;  %2412 = vmatmul.mubr.msk.bf16.vlgmr.msra.gmra.mrb[12].mxu0 %vm1201_vm3, %v1442_v55 }
 0x61e   : > { %2416 = vmatpush3.bf16.msra.mxu1 %v1546_v46  ;;  %2422 = vmatpush3.bf16.msra.mxu0 %v1592_v47 }
 0x61f   : > { %2417 = vmatprep.mubr.msk.bf16.mxu1 %vm2909_vm2, %v2908_v9  ;;  %2423 = vmatprep.mubr.msk.bf16.mxu0 %vm2909_vm2, %v2908_v9 }
 0x620   : > { %2427 = vmatprep.subr.bf16.mxu1 %v2908_v9  ;;  %2435 = vmatprep.subr.bf16.mxu0 %v2908_v9 }
 0x632   : > { %v1429_v58 = vpop.xlane.xlu0 %1428 }
 0x633   : > { %2613 = vrcp.f32 %v1429_v58 }
 0x635   : > { %v1432_v26 = vpop.xlane.xlu1 %1431 }
 0x636   : > { %2615 = vrcp.f32 %v1432_v26 }
 0x63d   : > { %v2614_v25 = vpop.eup %2613 }
 0x63e   : > { %v1439_v27 = vmul.f32 %v2614_v25, %v3493_v56 }
 0x640   : > { %v2616_v59 = vpop.eup %2615  ;;  %v1443_v60 = vpack.c.bf16 %v1439_v27, %v1439_v27 }
 0x641   : > { %v1440_v61 = vmul.f32 %v2616_v59, %v3495_v57 }
 0x642   : > { %2418 = vmatmul.mubr.msk.bf16.vlgmr.msra.gmra.mrb[12].mxu1 %vm1201_vm3, %v1443_v60 }
 0x643   : > { %v1444_v62 = vpack.c.bf16 %v1440_v61, %v1440_v61  ;;  %2431 = vmatprep.mubr.msk.bf16.mxu1 %vm2909_vm2, %v2908_v9  ;;  %2428 = vmatpush3.bf16.msra.mxu1 %v2591_v63 }
 0x644   : > { %2429 = vmatprep.subr.bf16.mxu1 %v2908_v9 }
 0x645   : > { %2424 = vmatmul.mubr.msk.bf16.vlgmr.msra.gmra.mrb[16].mxu0 %vm1201_vm3, %v1444_v62  ;;  %v2317_v62 = vld [vmem:[%s3753_s10] ss:$0 sm:$0xff] }
 0x646   : > { %2439 = vmatprep.mubr.msk.bf16.mxu0 %vm2909_vm2, %v2908_v9 }
 0x647   : > { %2430 = vmatpush3.bf16.msra.mxu1 %v2592_v33 }
 0x648   : > { %2443 = vmatprep.subr.bf16.mxu1 %v2908_v9 }
 0x6f0   : > { %v1490_v56 = vpop.f32.mrb[8].mxu1  ;;  %v1536_v0 = vpop.f32.mrb[12].mxu0 }
 0x6f1   : > { %v2407_v2 = vpop.f32.mrb[9].mxu1  ;;  %v2413_v3 = vpop.f32.mrb[13].mxu0 }
 0x6f2   : > { %v1493_v57 = vpop.f32.mrb[10].mxu1  ;;  %v1539_v4 = vpop.f32.mrb[14].mxu0 }
 0x6f3   : > { %v2408_v5 = vpop.f32.mrb[11].mxu1  ;;  %v2414_v6 = vpop.f32.mrb[15].mxu0 }
 0x715   : > { %v1582_v7 = vpop.f32.mrb[12].mxu1 }
 0x716   : > { %v1634_v8 = vcombine.low %v1490_v56, %v1582_v7  ;;  %v1635_v10 = vcombine.high %v1490_v56, %v1582_v7  ;;  %v2419_v11 = vpop.f32.mrb[13].mxu1 }
 0x717   : > { %v1585_v12 = vpop.f32.mrb[14].mxu1  ;;  %v2593_v11 = vld [vmem:[%s3343_s28] sm:$0xff]  }
 0x718   : > { %v2420_v13 = vpop.f32.mrb[15].mxu1  ;;  %v1628_v14 = vpop.f32.mrb[16].mxu0  ;;  %v1642_v19 = vrot.slane %v1634_v8, %v3406_v38  ;;  %v1649_v20 = vrot.slane %v1635_v10, %v3406_v38  ;;  %2436 = vmatpush3.bf16.msra.mxu0 %v2593_v11  ;;  %v2594_v12 = vld [vmem:[%s3343_s28 + $0x8] sm:$0xff]  }
 0x719   : > { %v1650_v15 = vcombine.low %v1536_v0, %v1628_v14  ;;  %v1651_v16 = vcombine.high %v1536_v0, %v1628_v14  ;;  %v2425_v17 = vpop.f32.mrb[17].mxu0  ;;  %2437 = vmatprep.subr.bf16.mxu0 %v2908_v9 }
 0x71a   : > { %v1631_v18 = vpop.f32.mrb[18].mxu0 }
 0x71b   : > { %v1658_v30 = vrot.slane %v1650_v15, %v3406_v38  ;;  %v1665_v22 = vrot.slane %v1651_v16, %v3406_v38  ;;  %v2426_v23 = vpop.f32.mrb[19].mxu0  ;;  %v2321_v16 = vld [vmem:[%s3754_s2] ss:$0 sm:$0xff] }
 0x71c   : > { %2438 = vmatpush3.bf16.msra.mxu0 %v2594_v12  ;;  %v2598_v23 = vld [vmem:[%s3349_s26 + $0x18] sm:$0xff]  }
 0x71d   : > { %v1666_v24 = vcombine.low %v1642_v19, %v1658_v30  ;;  %v1667_v28 = vcombine.high %v1642_v19, %v1658_v30  ;;  %v1682_v29 = vcombine.low %v1649_v20, %v1665_v22  ;;  %v1683_v31 = vcombine.high %v1649_v20, %v1665_v22  ;;  %v2595_v20 = vld [vmem:[%s3349_s26] sm:$0xff]   ;;  %v2596_v30 = vld [vmem:[%s3349_s26 + $0x8] sm:$0xff]   ;;  %v2597_v22 = vld [vmem:[%s3349_s26 + $0x10] sm:$0xff]  }
 0x71f   : > { %v1674_v34 = vrot.slane %v1666_v24, %v3417_v48  ;;  %v1681_v35 = vrot.slane %v1667_v28, %v3417_v48  ;;  %v1690_v36 = vrot.slane %v1682_v29, %v3417_v48  ;;  %v1697_v37 = vrot.slane %v1683_v31, %v3417_v48  ;;  %v2322_v24 = vld [vmem:[%s545_s11] ss:$0 sm:$0xff] }
 0x721   : > { %v1702_v39 = vcombine.low %v1674_v34, %v1681_v35  ;;  %v2315_v40 = vcombine.high %v1674_v34, %v1681_v35  ;;  %v1718_v41 = vcombine.low %v1690_v36, %v1697_v37  ;;  %v2316_v42 = vcombine.high %v1690_v36, %v1697_v37 }
 0x723   : > { %v1709_v43 = vrot.slane %v1702_v39, %v3406_v38  ;;  %v1717_v32 = vrot.slane %v2315_v40, %v3406_v38  ;;  %v1725_v44 = vrot.slane %v1718_v41, %v3406_v38  ;;  %v1733_v45 = vrot.slane %v2316_v42, %v3406_v38 }
 0x725   : > { %v1735_v49 = vcombine.high %v1709_v43, %v1717_v32  ;;  %v1751_v50 = vcombine.high %v1725_v44, %v1733_v45  ;;  %v1734_v21 = vcombine.low %v1709_v43, %v1717_v32  ;;  %v1750_v51 = vcombine.low %v1725_v44, %v1733_v45 }
 0x727   : > { %v1749_v52 = vrot.slane %v1735_v49, %v3417_v48  ;;  %v1765_v53 = vrot.slane %v1751_v50, %v3417_v48  ;;  %v1742_v54 = vrot.slane %v1734_v21, %v3417_v48  ;;  %v1758_v55 = vrot.slane %v1750_v51, %v3417_v48 }
 0x729   : > { %v1768_v46 = vcombine.low %v1749_v52, %v1765_v53  ;;  %v1767_v47 = vcombine.high %v1742_v54, %v1758_v55  ;;  %v1769_v58 = vcombine.high %v1749_v52, %v1765_v53  ;;  %v1766_v26 = vcombine.low %v1742_v54, %v1758_v55 }
 0x72b   : > { %1775 = vrot.lane.b32.xlu1 %v1768_v46, %s2917_s3  ;;  %1771 = vrot.lane.b32.xlu0 %v1767_v47, %s2918_s16 }
 0x72f   : > { %1779 = vrot.lane.b32.xlu0 %v1769_v58, %s2919_s30 }
 0x79d   : > { %v1772_v38 = vpop.permute.xlu0 %1771  ;;  %v1776_v25 = vpop.permute.xlu1 %1775 }
 0x79e   : > { %v1782_v27 = vsel %vm1201_vm3, %v1766_v26, %v1772_v38 }
 0x79f   : > { %v1784_v60 = vsel %vm1783_vm6, %v1782_v27, %v1776_v25 }
 0x7a1   : > { %v1780_v59 = vpop.permute.xlu0 %1779 }
 0x7a2   : > { %v1786_v48 = vsel %vm1785_vm7, %v1784_v60, %v1780_v59 }
 0x7a3   : > { %v1787_v61 = vpack.c.bf16 %v1786_v48, %v1786_v48 }
 0x7a5   : > { %2432 = vmatmul.mubr.msk.bf16.vlgmr.msra.gmra.mrb[16].mxu1 %vm662_vm1, %v1787_v61 }
 0x7a6   : > { %2451 = vmatprep.mubr.msk.bf16.mxu1 %vm2909_vm2, %v2908_v9  ;;  %2444 = vmatpush3.bf16.msra.mxu1 %v2595_v20 }
 0x7a7   : > { %2445 = vmatprep.subr.bf16.mxu1 %v2908_v9 }
 0x7aa   : > { %2446 = vmatpush3.bf16.msra.mxu1 %v2596_v30 }
 0x7ab   : > { %2447 = vmatprep.subr.bf16.mxu1 %v2908_v9 }
 0x7ae   : > { %2448 = vmatpush3.bf16.msra.mxu1 %v2597_v22 }
 0x7af   : > { %2449 = vmatprep.subr.bf16.mxu1 %v2908_v9  ;;  %v2326_v9 = vld [vmem:[%s651_s14] ss:$0 sm:$0xff] }
 0x7b2   : > { %2450 = vmatpush3.bf16.msra.mxu1 %v2598_v23 }
 0x878   : > { %v1848_v63 = vpop.f32.mrb[16].mxu1 }
 0x879   : > { %v1849_v56 = vadd.f32 %v2317_v62, %v1848_v63  ;;  %v2433_v0 = vpop.f32.mrb[17].mxu1 }
 0x87a   : > { %v1851_v2 = vpop.f32.mrb[18].mxu1 }
 0x87b   : > { %v1854_v3 = vadd.f32 %v1849_v56, %v3359_v1  ;;  %v2434_v57 = vpop.f32.mrb[19].mxu1 }
 0x87d   : > { %v1856_v4 = vsel %vm662_vm1, %v1854_v3, 0.0 }
 0x87e   : > { %1857 = vadd.xlane.f32.xlu1 %v1856_v4 }
 0x90b   : > { %v1858_v5 = vpop.xlane.xlu1 %1857 }
 0x90c   : > { %v1859_v6 = vmul.f32 0.03125, %v1858_v5 }
 0x90e   : > { %v1860_v7 = vsub.f32 %v1854_v3, %v1859_v6 }
 0x910   : > { %v1861_v8 = vmul.f32 %v1860_v7, %v1860_v7 }
 0x912   : > { %v1862_v10 = vsel %vm662_vm1, %v1861_v8, 0.0 }
 0x913   : > { %1863 = vadd.xlane.f32.xlu0 %v1862_v10 }
 0x9a0   : > { %v1864_v1 = vpop.xlane.xlu0 %1863 }
 0x9a1   : > { %v1865_v13 = vmul.f32 0.03125, %v1864_v1 }
 0x9a3   : > { %v1866_v14 = vadd.f32 1e-05, %v1865_v13 }
 0x9a5   : > { %2617 = vrsqrt.f32 %v1866_v14 }
 0x9af   : > { %v2618_v15 = vpop.eup %2617 }
 0x9b0   : > { %v1868_v17 = vmul.f32 %v2618_v15, %v1860_v7 }
 0x9b2   : > { %v1875_v18 = vmul.f32 %v2321_v16, %v1868_v17 }
 0x9b4   : > { %v1876_v19 = vpack.c.bf16 %v1875_v18, %v1875_v18 }
 0x9b6   : > { %2440 = vmatmul.mubr.msk.bf16.vlgmr.msra.gmra.mrb[20].mxu0 %vm662_vm1, %v1876_v19 }
 0xa89   : > { %v1937_v28 = vpop.f32.mrb[20].mxu0 }
 0xa8a   : > { %v1938_v29 = vadd.f32 %v2322_v24, %v1937_v28  ;;  %v2441_v31 = vpop.f32.mrb[21].mxu0 }
 0xa8b   : > { %v1940_v33 = vpop.f32.mrb[22].mxu0 }
 0xa8c   : > { %v1944_v34 = vmul.f32 0.70710677, %v1938_v29  ;;  %v2442_v35 = vpop.f32.mrb[23].mxu0  ;;  %v1943_v37 = vmul.f32 0.5, %v1938_v29 }
 0xa8e   : > { %2619 = verf.f32 %v1944_v34 }
 0xa98   : > { %v2620_v36 = vpop.eup %2619 }
 0xa99   : > { %v1946_v39 = vadd.f32 1.0, %v2620_v36 }
 0xa9b   : > { %v1947_v40 = vmul.f32 %v1946_v39, %v1943_v37 }
 0xa9d   : > { %v1948_v41 = vpack.c.bf16 %v1947_v40, %v1947_v40 }
 0xa9f   : > { %2452 = vmatmul.mubr.msk.bf16.vlgmr.msra.gmra.mrb[20].mxu1 %vm1988_vm8, %v1948_v41 }
 0xb71   : > { %2037 = sbr.rel (%p2332_p7) target bundleno = 2936 (0xb78), region = 92 }
 0xb72   : > { %v2026_v42 = vpop.f32.mrb[20].mxu1 }
 0xb73   : > { %v2027_v43 = vadd.f32 %v2326_v9, %v2026_v42  ;;  %v2453_v32 = vpop.f32.mrb[21].mxu1 }
 0xb74   : > { %v2029_v44 = vpop.f32.mrb[22].mxu1 }
 0xb75   : > { %v2032_v45 = vadd.f32 %v2027_v43, %v1854_v3  ;;  %v2454_v49 = vpop.f32.mrb[23].mxu1 }
 0xb77   : > { %2033 = vst.msk [vmem:[#allocation2] sm:$0xff] %vm662_vm1, %v2032_v45  ;;  %2038 = vst.msk [vmem:[%s3356_s21] sm:$0xff] (!%p2332_p7), %vm662_vm1, %v2032_v45 }
 0xb78 PF: > { %s3757_s17 = sld [smem:[#allocation21_spill]]  ;;  %s3758_s14 = sld [smem:[#allocation41_spill]] }
 0xb79   : > { %s2053_s5 = sshll.u32 %s3356_s21, 4  ;;  %s2040_s8 = scalar_lea.sflag [#allocation5], %s3300_s25  ;;  %s2054_s5 = int_to_ptr.vmem [resolvable:$true] %s2053_s5 }
 0xb7a   : > { %s2771_s22 = scalar_lea.vmem %s2054_s5, 128  ;;  %p3759_p13 = scmp.ne.s32.totalorder %s3728_s13, 0 }
 0xb7b   : > { %p2772_p12 = scmp.ne.s32.totalorder %s2054_s5, %s2771_s22  ;;  %s2920_s4 = smov [#allocation12]  }
 0xb7c   : > { %s2775_s19 = sshll.u32 %s2920_s4, 4  ;;  %s2776_s19 = int_to_ptr.vmem [resolvable:$false] %s2775_s19 }
 0xb7d   : > { %p2773_p0 = pnand %p2772_p12, %p3759_p13  ;;  %s2777_s0 = scalar_lea.vmem %s2776_s19, 256 }
 0xb7e   : > { %s2334_s7 = sshll.u32 %s3757_s17, 7  ;;  %p2778_p1 = scmp.lt.s32.totalorder %s2054_s5, %s2776_s19 }
 0xb7f   : > { %s3598_s11 = scalar_lea.hbm %s3758_s14, %s2334_s7  ;;  %p2774_p4 = pneg %p2773_p0 }
 0xb80   : > { %p2779_p3 = scmp.lt.s32.totalorder %s2777_s0, %s2771_s22 }
 0xb82   : > { %p2780_p5 = por %p2779_p3, %p2778_p1 }
 0xb84   : > { %p2781_p10 = pnand %p2780_p5, %p2774_p4 }
 0xb86   : > { %2784 = shalt.err (!%p2781_p10)
}
 0xb87   : > { %s2785_s21 = scalar_lea.hbm %s3598_s11, 128  ;;  %s2789_s12 = scalar_lea.hbm %s3758_s14, 256 }
 0xb88   : > { %p2786_p8 = scmp.ne.s32.totalorder %s3598_s11, %s2785_s21  ;;  %p2790_p2 = scmp.lt.u32.totalorder %s3598_s11, %s3758_s14 }
 0xb89   : > { %p2791_p6 = scmp.lt.u32.totalorder %s2789_s12, %s2785_s21  ;;  %p2793_p12 = scmp.lt.u32.totalorder %s2785_s21, %s3598_s11 }
 0xb8a   : > { %p2787_p11 = pnand %p2786_p8, %p3759_p13 }
 0xb8b   : > { %p2792_p7 = por %p2791_p6, %p2790_p2 }
 0xb8c   : > { %p2788_p9 = pneg %p2787_p11 }
 0xb8d   : > { %p2794_p0 = por %p2793_p12, %p2792_p7 }
 0xb8f   : > { %p2795_p4 = pnand %p2794_p0, %p2788_p9 }
 0xb91   : > { %2798 = shalt.err (!%p2795_p4)
}
 0xb92   : > { %2465 = dma.vmem_to_hbm [thread:$0]  (%p3759_p13), %s2054_s5, 128, %s3598_s11, %s2040_s8  }
 0xb93 PF: > { %s3760_s3 = sld [smem:[#allocation29_spill]]  ;;  %p2488_p1 = scmp.ge.s32.totalorder %s2901_s27, 2 }
 0xb94   : > { %s2065_s16 = sand.u32 1, %s2873_s20  }
 0xb95   : > { %s2066_s30 = scalar_lea.sflag [#allocation5], %s2065_s16 }
 0xb99   : > { %p3761_p3 = scmp.ne.s32.totalorder %s3760_s3, 0 }
 0xb9b   : > { %p2484_p5 = pnand %p2488_p1, %p3761_p3 }
 0xb9d   : > { %2856 = dma.done.wait (!%p2484_p5), %s2066_s30, 128  }
 0xb9e   : > { %2858 = vsyncadd (!%p2484_p5), %s2066_s30, 4294967168  ;;  %s33_s27 = sadd.s32 1, %s2901_s27   ;;  %s3762_s10 = sld [smem:[#allocation17_spill]] }
 0xb9f   : > { %p30_p10 = scmp.ge.s32.totalorder %s33_s27, 6   ;;  %s3763_s19 = sld [smem:[#allocation25_spill]] }
 0xba0   : > { %s3764_s20 = sld [smem:[#allocation18_spill]]  ;;  %s3765_s21 = sld [smem:[#allocation19_spill]] }
 0xba1   : > { %s3766_s22 = sld [smem:[#allocation28_spill]]  ;;  %s3767_s23 = sld [smem:[#allocation22_spill]] }
 0xba2   : > { %s3768_s24 = sld [smem:[#allocation23_spill]]  ;;  %s3769_s25 = sld [smem:[#allocation24_spill]] }
 0xba3   : > { %s3770_s26 = sld [smem:[#allocation26_spill]]  ;;  %s3771_s17 = smov %s2865_s18 }
 0xba4   : > { %s3772_s18 = smov %s3762_s10  ;;  %32 = sbr.rel (!%p30_p10) target bundleno = 26 (0x1a), region = 183 }
 0xbab   :  { %2071 = vsyncpa [#allocation4], 1 }
 0xbac   :  { %2073 = vsyncpa [#allocation4 + $0x1], 1 }
 0xbad   :  { %2074 = vsyncpa [#allocation7], 1 }
 0xbae   :  { %2076 = vsyncpa [#allocation7 + $0x1], 1 }
 0xbaf   :  { %2077 = vsyncpa [#allocation10], 1 }
 0xbb0   :  { %2079 = vsyncpa [#allocation10 + $0x1], 1 }
 0xbb1   :  { %2080 = vsyncpa [#allocation5], 1 }
 0xbb2   :  { %2082 = vsyncpa [#allocation5 + $0x1], 1 }

</bundles_post_ra>
